<compile_context>
chip_gen: v5e
topology: v5e:2x2
jax: 0.10.0
libtpu: 0.0.40
codegen_flags: <defaults>
</compile_context>

<pallas_src>
import functools

import jax
import jax.numpy as jnp
import numpy as np
from jax import lax
from jax.experimental import pallas as pl
from jax.experimental.pallas import tpu as pltpu

NEG_SLOPE = 0.01   # nn.LeakyReLU default negative_slope
BN_EPS = 1e-5      # nn.BatchNorm2d default eps
LANE = 128         # TPU lane width
SUBLANE = 8        # TPU sublane width


def _double_conv_kernel(x_hbm, w1_ref, s1_ref, b1_ref, w2_ref, s2_ref, b2_ref,
                        o_ref, xbuf, h_ref, dma_sem):
    """One (batch, row-strip) tile of the fused DoubleConv.

    x_hbm  : (N, (H+1)*Wp, Cin_p)  bf16 HBM input, H and W flattened (memory_space=ANY)
    w1_ref : (9, Cin_p, Cout_p)    bf16 conv1 weights, one (Cin_p, Cout_p) tile per tap
    s1/b1  : (1, Cout_p)           f32 folded BN1 scale / bias (conv1 bias folded in)
    w2_ref : (9, Cout_p, Cout_p)   bf16 conv2 weights
    s2/b2  : (1, Cout_p)           f32 folded BN2 scale / bias
    o_ref  : (1, strip, Wp, Cout_p) bf16 output tile (lane-dense, sublane-aligned)
    xbuf   : (2, (strip+5)*Wp, Cin_p) bf16 double-buffered halo'd input strip
    h_ref  : ((strip+3)*Wp, Cout_p)   bf16 conv1 intermediate (+1 row of padding)
    """
    n = pl.program_id(0)
    s = pl.program_id(1)
    n_strips = pl.num_programs(1)

    strip = o_ref.shape[1]                 # output rows computed this step
    Wp = o_ref.shape[2]                    # padded width (multiple of 8)
    cout_p = o_ref.shape[3]
    rows_fetch = xbuf.shape[1]             # (strip + 5) * Wp flat rows per strip
    H1 = strip + 2                         # conv1 output rows for this strip
    H2 = strip                             # conv2 output rows for this strip

    def fetch(strip_idx, slot):
        start = pl.multiple_of(strip_idx * (strip * Wp), Wp)
        return pltpu.make_async_copy(
            x_hbm.at[n, pl.ds(start, rows_fetch), :],
            xbuf.at[slot],
            dma_sem.at[slot])

    slot = s % 2

    @pl.when(s == 0)                       # first strip of this image: fetch it now
    def _():
        fetch(s, slot).start()

    @pl.when(s + 1 < n_strips)             # prefetch next strip of the SAME image into
    def _():                               # the other slot (overlaps with compute below)
        fetch(s + 1, 1 - slot).start()

    fetch(s, slot).wait()                  # wait for the strip we are about to use
    xf = xbuf[slot]                        # ((strip+5)*Wp, Cin_p) bf16

    # ---- conv1: 9-tap accumulation.  A tap (dy, dx) is a shift of dy*Wp+dx in the
    #      flattened row index; columns >= Wp-2 pick up wrapped values and are
    #      discarded downstream, so no masking is needed. ----
    acc1 = jnp.zeros((H1 * Wp, cout_p), jnp.float32)
    for t in range(9):
        dy, dx = divmod(t, 3)
        off = dy * Wp + dx
        acc1 = acc1 + jnp.dot(xf[off:off + H1 * Wp, :], w1_ref[t],
                              preferred_element_type=jnp.float32)

    # BN1 (eval, folded) + Dropout (identity in eval) + LeakyReLU, epilogue in f32.
    h = acc1 * s1_ref[...] + b1_ref[...]
    h = jnp.maximum(h, NEG_SLOPE * h)
    h_ref[pl.ds(0, H1 * Wp), :] = h.astype(h_ref.dtype)
    h_ref[pl.ds(H1 * Wp, Wp), :] = jnp.zeros((Wp, cout_p), h_ref.dtype)  # pad rows

    # ---- conv2: same 9-tap accumulation on the bf16 intermediate ----
    hf = h_ref[...]
    acc2 = jnp.zeros((H2 * Wp, cout_p), jnp.float32)
    for t in range(9):
        dy, dx = divmod(t, 3)
        off = dy * Wp + dx
        acc2 = acc2 + jnp.dot(hf[off:off + H2 * Wp, :], w2_ref[t],
                              preferred_element_type=jnp.float32)

    # BN2 + Dropout (identity) + LeakyReLU.
    y = acc2 * s2_ref[...] + b2_ref[...]
    y = jnp.maximum(y, NEG_SLOPE * y)
    o_ref[0] = y.reshape(H2, Wp, cout_p).astype(o_ref.dtype)


def _round_up(v, m):
    return (v + m - 1) // m * m


def _fold_bn(conv_bias, gamma, beta, running_mean, running_var):
    """Fold conv bias + eval-mode BatchNorm into per-channel (scale, bias)."""
    scale = gamma / jnp.sqrt(running_var + BN_EPS)
    bias = (conv_bias - running_mean) * scale + beta
    return scale.reshape(1, -1), bias.reshape(1, -1)


def _vmem_capacity_bytes():
    try:
        return int(pltpu.get_tpu_info().vmem_capacity_bytes)
    except Exception:
        return 64 * 1024 * 1024   # conservative fallback (v7x); v5e/v6e have 128 MiB


def _vmem_bytes(strip, Wp, cin_p, cout_p):
    """Approximate per-step VMEM footprint for a given row strip."""
    strip_in = strip + 4
    H1, H2 = strip + 2, strip
    xbuf = 2 * (strip_in + 1) * Wp * cin_p * 2      # double-buffered bf16 input strips
    xval = (strip_in + 1) * Wp * cin_p * 2          # loaded strip value
    hbuf = 2 * (H1 + 1) * Wp * cout_p * 2           # bf16 intermediate (scratch + value)
    accs = (H1 + H2) * Wp * cout_p * 4              # f32 accumulators
    taps = 2 * H1 * Wp * max(cin_p, cout_p) * 2     # a couple of live tap operand slices
    outb = 2 * H2 * Wp * cout_p * 2                 # double-buffered bf16 output block
    wts = 2 * 9 * (cin_p + cout_p) * cout_p * 2     # (double-buffered) bf16 weights
    return xbuf + xval + hbuf + accs + taps + outb + wts


@functools.partial(jax.jit, static_argnames=("row_strip",))
def double_conv(x_nchw, params, *, row_strip=None):
    """DoubleConv forward. x_nchw: (N, Cin, H, W) f32 -> (N, Cout, H-4, W-4) f32."""
    (w1, b1, g1, be1, rm1, rv1, w2, b2, g2, be2, rm2, rv2) = params

    N, Cin, H, W = x_nchw.shape
    Cout = w1.shape[-1]
    assert H >= 5 and W >= 5, (H, W)
    H2t, W2t = H - 4, W - 4
    cin_p = _round_up(Cin, LANE)
    cout_p = _round_up(Cout, LANE)
    Wp = _round_up(W, SUBLANE)

    # Generation-aware VMEM budget (64 MiB physical on v7x, 128 MiB on v5e/v6e).
    vmem_cap = _vmem_capacity_bytes()
    vmem_limit = min(vmem_cap * 3 // 4, 100 * 1024 * 1024)

    # Output rows per grid step (must divide H-4): largest divisor whose real VMEM
    # footprint (buffers + accumulators + weights + output block) fits the budget.
    if row_strip is None:
        budget = int(vmem_limit * 0.8)
        fitting = [d for d in range(1, H2t + 1)
                   if H2t % d == 0 and _vmem_bytes(d, Wp, cin_p, cout_p) <= budget]
        row_strip = max(fitting) if fitting else 1
    assert H2t % row_strip == 0, (H2t, row_strip)
    n_strips = H2t // row_strip
    strip_in = row_strip + 4                    # 2 halo rows per conv
    vmem_limit = max(vmem_limit,
                     min(int(vmem_cap * 0.9),
                         _vmem_bytes(row_strip, Wp, cin_p, cout_p) + (4 << 20)))

    # NCHW -> NHWC once; pad width to a sublane multiple, channels to a lane multiple,
    # and one extra zero row so every strip (incl. the last) fetches (strip+5)*Wp flat
    # rows; flatten H,W so the halo'd strip is one contiguous, aligned DMA.
    x = jnp.transpose(x_nchw, (0, 2, 3, 1))
    x = jnp.pad(x, ((0, 0), (0, 1), (0, Wp - W), (0, cin_p - Cin)))
    x = x.astype(jnp.bfloat16).reshape(N, (H + 1) * Wp, cin_p)

    w1p = jnp.pad(w1, ((0, 0), (0, 0), (0, cin_p - Cin), (0, cout_p - Cout)))
    w2p = jnp.pad(w2, ((0, 0), (0, 0), (0, cout_p - Cout), (0, cout_p - Cout)))
    w1_taps = w1p.reshape(9, cin_p, cout_p).astype(jnp.bfloat16)
    w2_taps = w2p.reshape(9, cout_p, cout_p).astype(jnp.bfloat16)

    s1, bb1 = _fold_bn(b1, g1, be1, rm1, rv1)
    s2, bb2 = _fold_bn(b2, g2, be2, rm2, rv2)
    cpad = ((0, 0), (0, cout_p - Cout))
    s1, bb1 = jnp.pad(s1, cpad), jnp.pad(bb1, cpad)
    s2, bb2 = jnp.pad(s2, cpad), jnp.pad(bb2, cpad)

    flops = 2 * N * Wp * 9 * ((H - 2) * cin_p * cout_p + H2t * cout_p * cout_p)
    bytes_accessed = (x.size * 2 + (w1_taps.size + w2_taps.size) * 2
                      + N * H2t * Wp * cout_p * 2)
    cost = pl.CostEstimate(flops=int(flops), transcendentals=0,
                           bytes_accessed=int(bytes_accessed))

    out_nhwc = pl.pallas_call(
        _double_conv_kernel,
        out_shape=jax.ShapeDtypeStruct((N, H2t, Wp, cout_p), jnp.bfloat16),
        grid=(N, n_strips),
        in_specs=[
            pl.BlockSpec(memory_space=pl.ANY),                          # x: manual DMA
            pl.BlockSpec((9, cin_p, cout_p), lambda n, s: (0, 0, 0)),   # w1 taps
            pl.BlockSpec((1, cout_p), lambda n, s: (0, 0)),             # bn1 scale
            pl.BlockSpec((1, cout_p), lambda n, s: (0, 0)),             # bn1 bias
            pl.BlockSpec((9, cout_p, cout_p), lambda n, s: (0, 0, 0)),  # w2 taps
            pl.BlockSpec((1, cout_p), lambda n, s: (0, 0)),             # bn2 scale
            pl.BlockSpec((1, cout_p), lambda n, s: (0, 0)),             # bn2 bias
        ],
        out_specs=pl.BlockSpec((1, row_strip, Wp, cout_p),
                               lambda n, s: (n, s, 0, 0)),
        scratch_shapes=[
            pltpu.VMEM((2, (strip_in + 1) * Wp, cin_p), jnp.bfloat16),  # dbuf input strip
            pltpu.VMEM(((row_strip + 3) * Wp, cout_p), jnp.bfloat16),   # conv1 intermediate
            pltpu.SemaphoreType.DMA((2,)),
        ],
        compiler_params=pltpu.CompilerParams(
            # Strip axis is "arbitrary" so the per-image prefetch chain runs
            # sequentially on one core; batch axis stays "parallel" for megacore.
            dimension_semantics=("parallel", "arbitrary"),
            vmem_limit_bytes=int(vmem_limit),
        ),
        cost_estimate=cost,
    )(x, w1_taps, s1, bb1, w2_taps, s2, bb2)

    # Drop width/channel padding, back to NCHW f32 (at model scope the next block
    # would consume the bf16 NHWC padded tensor directly).
    out = out_nhwc[:, :, :W2t, :Cout]
    return jnp.transpose(out, (0, 3, 1, 2)).astype(jnp.float32)


def _reference(x_nchw, params):
    """Pure-JAX reference with the same precision policy (bf16 operands, f32 acc,
    bf16 intermediate and bf16 final writeback)."""
    (w1, b1, g1, be1, rm1, rv1, w2, b2, g2, be2, rm2, rv2) = params
    x = jnp.transpose(x_nchw, (0, 2, 3, 1))
    dn = ('NHWC', 'HWIO', 'NHWC')

    def block(h, w, b, g, be, rm, rv):
        h = lax.conv_general_dilated(
            h.astype(jnp.bfloat16), w.astype(jnp.bfloat16),
            window_strides=(1, 1), padding='VALID', dimension_numbers=dn,
            preferred_element_type=jnp.float32) + b
        h = (h - rm) / jnp.sqrt(rv + BN_EPS) * g + be
        return jnp.where(h >= 0, h, NEG_SLOPE * h)

    h = block(x, w1, b1, g1, be1, rm1, rv1)
    h = block(h, w2, b2, g2, be2, rm2, rv2)
    h = h.astype(jnp.bfloat16).astype(jnp.float32)   # match kernel's bf16 writeback
    return jnp.transpose(h, (0, 3, 1, 2))


def init_params(key, in_channels, out_channels):
    """Deterministic synthetic parameter init (shapes match the PyTorch module, HWIO)."""
    ks = jax.random.split(key, 8)
    w1 = jax.random.normal(ks[0], (3, 3, in_channels, out_channels), jnp.float32) * 0.1
    b1 = jax.random.normal(ks[1], (out_channels,), jnp.float32) * 0.1
    g1 = 1.0 + 0.1 * jax.random.normal(ks[2], (out_channels,), jnp.float32)
    be1 = 0.1 * jax.random.normal(ks[3], (out_channels,), jnp.float32)
    rm1 = jnp.zeros((out_channels,), jnp.float32)   # BatchNorm2d init running_mean
    rv1 = jnp.ones((out_channels,), jnp.float32)    # BatchNorm2d init running_var

    w2 = jax.random.normal(ks[4], (3, 3, out_channels, out_channels), jnp.float32) * 0.1
    b2 = jax.random.normal(ks[5], (out_channels,), jnp.float32) * 0.1
    g2 = 1.0 + 0.1 * jax.random.normal(ks[6], (out_channels,), jnp.float32)
    be2 = 0.1 * jax.random.normal(ks[7], (out_channels,), jnp.float32)
    rm2 = jnp.zeros((out_channels,), jnp.float32)
    rv2 = jnp.ones((out_channels,), jnp.float32)
    return (w1, b1, g1, be1, rm1, rv1, w2, b2, g2, be2, rm2, rv2)


if __name__ == "__main__":
    key = jax.random.PRNGKey(0)
    k_x, k_p = jax.random.split(key)

    N, Cin, Cout, H, W = 2, 4, 8, 16, 16
    x = jax.random.normal(k_x, (N, Cin, H, W), jnp.float32)
    params = init_params(k_p, Cin, Cout)

    ref = jax.block_until_ready(_reference(x, params))

    # row_strip=4 -> 3 row strips per image, grid (2, 3): exercises the
    # double-buffered halo-DMA prefetch chain.
    out = jax.block_until_ready(double_conv(x, params, row_strip=4))
    assert out.shape == (N, Cout, H - 4, W - 4), out.shape
    np.testing.assert_allclose(np.asarray(out), np.asarray(ref), rtol=1e-2, atol=1e-2)

    # Default heuristic path (picks the whole image as one strip at this size).
    out2 = jax.block_until_ready(double_conv(x, params))
    np.testing.assert_allclose(np.asarray(out2), np.asarray(ref), rtol=1e-2, atol=1e-2)

    print("KERNEL_OK")
</pallas_src>

<mosaic_0001>
module attributes {stable_mosaic.version = 11 : i64} {
  func.func @_double_conv_kernel(%arg0: i32, %arg1: i32, %arg2: memref<2x272x128xbf16, #tpu.memory_space<any>>, %arg3: memref<9x128x128xbf16, #tpu.memory_space<vmem>>, %arg4: memref<1x128xf32, #tpu.memory_space<vmem>>, %arg5: memref<1x128xf32, #tpu.memory_space<vmem>>, %arg6: memref<9x128x128xbf16, #tpu.memory_space<vmem>>, %arg7: memref<1x128xf32, #tpu.memory_space<vmem>>, %arg8: memref<1x128xf32, #tpu.memory_space<vmem>>, %arg9: memref<1x4x16x128xbf16, #tpu.memory_space<vmem>>, %arg10: memref<2x144x128xbf16, #tpu.memory_space<vmem>>, %arg11: memref<112x128xbf16, #tpu.memory_space<vmem>>, %arg12: memref<2x!tpu.dma_semaphore, #tpu.memory_space<semaphore_mem>>) attributes {dimension_semantics = [#tpu.dimension_semantics<parallel>, #tpu.dimension_semantics<arbitrary>], iteration_bounds = array<i64: 2, 3>, scalar_prefetch = 0 : i64, scratch_operands = 3 : i64, tpu.core_type = #tpu.core_type<tc>, window_params = [{}, {pipeline_mode = #tpu.pipeline_mode<synchronous>, transform_indices = @transform_1, window_bounds = array<i64: 9, 128, 128>}, {pipeline_mode = #tpu.pipeline_mode<synchronous>, transform_indices = @transform_2, window_bounds = array<i64: 1, 128>}, {pipeline_mode = #tpu.pipeline_mode<synchronous>, transform_indices = @transform_3, window_bounds = array<i64: 1, 128>}, {pipeline_mode = #tpu.pipeline_mode<synchronous>, transform_indices = @transform_4, window_bounds = array<i64: 9, 128, 128>}, {pipeline_mode = #tpu.pipeline_mode<synchronous>, transform_indices = @transform_5, window_bounds = array<i64: 1, 128>}, {pipeline_mode = #tpu.pipeline_mode<synchronous>, transform_indices = @transform_6, window_bounds = array<i64: 1, 128>}, {transform_indices = @transform_7, window_bounds = array<i64: 1, 4, 16, 128>}]} {
    %c2_i32 = arith.constant 2 : i32
    %c0_i32 = arith.constant 0 : i32
    %0 = arith.cmpi eq, %c2_i32, %c0_i32 : i32
    %c1_i32 = arith.constant 1 : i32
    %1 = arith.select %0, %c1_i32, %c2_i32 : i32
    %2 = arith.remsi %arg1, %1 : i32
    %c0_i32_0 = arith.constant 0 : i32
    %3 = arith.cmpi ne, %2, %c0_i32_0 : i32
    %c0_i32_1 = arith.constant 0 : i32
    %4 = arith.cmpi slt, %2, %c0_i32_1 : i32
    %c0_i32_2 = arith.constant 0 : i32
    %5 = arith.cmpi slt, %1, %c0_i32_2 : i32
    %6 = arith.xori %4, %5 : i1
    %7 = arith.andi %6, %3 : i1
    %8 = arith.addi %2, %1 : i32
    %9 = arith.select %7, %8, %2 : i32
    %c0_i32_3 = arith.constant 0 : i32
    %10 = arith.cmpi eq, %arg1, %c0_i32_3 : i32
    %11 = arith.extui %10 : i1 to i32
    %c0_i32_4 = arith.constant 0 : i32
    %12 = arith.cmpi ne, %11, %c0_i32_4 : i32
    scf.if %12 {
      %c64_i32_96 = arith.constant 64 : i32
      %148 = arith.muli %arg1, %c64_i32_96 : i32
      %149 = tpu.assume_multiple %148, 16 : i32
      %c0_i32_97 = arith.constant 0 : i32
      %150 = tpu.memref_slice %arg2[%arg0, %149, %c0_i32_97] : memref<2x272x128xbf16, #tpu.memory_space<any>> -> memref<1x144x128xbf16, #tpu.memory_space<any>>
      %151 = tpu.memref_squeeze %150 : memref<1x144x128xbf16, #tpu.memory_space<any>> -> memref<144x128xbf16, #tpu.memory_space<any>>
      %c0_i32_98 = arith.constant 0 : i32
      %c0_i32_99 = arith.constant 0 : i32
      %152 = tpu.memref_slice %arg10[%9, %c0_i32_98, %c0_i32_99] : memref<2x144x128xbf16, #tpu.memory_space<vmem>> -> memref<1x144x128xbf16, #tpu.memory_space<vmem>>
      %153 = tpu.memref_squeeze %152 : memref<1x144x128xbf16, #tpu.memory_space<vmem>> -> memref<144x128xbf16, #tpu.memory_space<vmem>>
      %154 = tpu.memref_slice %arg12[%9] : memref<2x!tpu.dma_semaphore, #tpu.memory_space<semaphore_mem>> -> memref<1x!tpu.dma_semaphore, #tpu.memory_space<semaphore_mem>>
      %155 = tpu.memref_squeeze %154 : memref<1x!tpu.dma_semaphore, #tpu.memory_space<semaphore_mem>> -> memref<!tpu.dma_semaphore, #tpu.memory_space<semaphore_mem>>
      tpu.enqueue_dma source(%151 : memref<144x128xbf16, #tpu.memory_space<any>>) target(%153 : memref<144x128xbf16, #tpu.memory_space<vmem>>) target_semaphore(%155 : memref<!tpu.dma_semaphore, #tpu.memory_space<semaphore_mem>>)
    } else {
    }
    %c1_i32_5 = arith.constant 1 : i32
    %13 = arith.addi %arg1, %c1_i32_5 : i32
    %c3_i32 = arith.constant 3 : i32
    %14 = arith.cmpi slt, %13, %c3_i32 : i32
    %15 = arith.extui %14 : i1 to i32
    %c0_i32_6 = arith.constant 0 : i32
    %16 = arith.cmpi ne, %15, %c0_i32_6 : i32
    scf.if %16 {
      %c1_i32_96 = arith.constant 1 : i32
      %148 = arith.addi %arg1, %c1_i32_96 : i32
      %c1_i32_97 = arith.constant 1 : i32
      %149 = arith.subi %c1_i32_97, %9 : i32
      %c64_i32_98 = arith.constant 64 : i32
      %150 = arith.muli %148, %c64_i32_98 : i32
      %151 = tpu.assume_multiple %150, 16 : i32
      %c0_i32_99 = arith.constant 0 : i32
      %152 = tpu.memref_slice %arg2[%arg0, %151, %c0_i32_99] : memref<2x272x128xbf16, #tpu.memory_space<any>> -> memref<1x144x128xbf16, #tpu.memory_space<any>>
      %153 = tpu.memref_squeeze %152 : memref<1x144x128xbf16, #tpu.memory_space<any>> -> memref<144x128xbf16, #tpu.memory_space<any>>
      %c0_i32_100 = arith.constant 0 : i32
      %c0_i32_101 = arith.constant 0 : i32
      %154 = tpu.memref_slice %arg10[%149, %c0_i32_100, %c0_i32_101] : memref<2x144x128xbf16, #tpu.memory_space<vmem>> -> memref<1x144x128xbf16, #tpu.memory_space<vmem>>
      %155 = tpu.memref_squeeze %154 : memref<1x144x128xbf16, #tpu.memory_space<vmem>> -> memref<144x128xbf16, #tpu.memory_space<vmem>>
      %156 = tpu.memref_slice %arg12[%149] : memref<2x!tpu.dma_semaphore, #tpu.memory_space<semaphore_mem>> -> memref<1x!tpu.dma_semaphore, #tpu.memory_space<semaphore_mem>>
      %157 = tpu.memref_squeeze %156 : memref<1x!tpu.dma_semaphore, #tpu.memory_space<semaphore_mem>> -> memref<!tpu.dma_semaphore, #tpu.memory_space<semaphore_mem>>
      tpu.enqueue_dma source(%153 : memref<144x128xbf16, #tpu.memory_space<any>>) target(%155 : memref<144x128xbf16, #tpu.memory_space<vmem>>) target_semaphore(%157 : memref<!tpu.dma_semaphore, #tpu.memory_space<semaphore_mem>>)
    } else {
    }
    %c64_i32 = arith.constant 64 : i32
    %17 = arith.muli %arg1, %c64_i32 : i32
    %18 = tpu.assume_multiple %17, 16 : i32
    %c0_i32_7 = arith.constant 0 : i32
    %19 = tpu.memref_slice %arg2[%arg0, %18, %c0_i32_7] : memref<2x272x128xbf16, #tpu.memory_space<any>> -> memref<1x144x128xbf16, #tpu.memory_space<any>>
    %20 = tpu.memref_squeeze %19 : memref<1x144x128xbf16, #tpu.memory_space<any>> -> memref<144x128xbf16, #tpu.memory_space<any>>
    %c0_i32_8 = arith.constant 0 : i32
    %c0_i32_9 = arith.constant 0 : i32
    %21 = tpu.memref_slice %arg10[%9, %c0_i32_8, %c0_i32_9] : memref<2x144x128xbf16, #tpu.memory_space<vmem>> -> memref<1x144x128xbf16, #tpu.memory_space<vmem>>
    %22 = tpu.memref_squeeze %21 : memref<1x144x128xbf16, #tpu.memory_space<vmem>> -> memref<144x128xbf16, #tpu.memory_space<vmem>>
    %23 = tpu.memref_slice %arg12[%9] : memref<2x!tpu.dma_semaphore, #tpu.memory_space<semaphore_mem>> -> memref<1x!tpu.dma_semaphore, #tpu.memory_space<semaphore_mem>>
    %24 = tpu.memref_squeeze %23 : memref<1x!tpu.dma_semaphore, #tpu.memory_space<semaphore_mem>> -> memref<!tpu.dma_semaphore, #tpu.memory_space<semaphore_mem>>
    tpu.wait_dma2 semaphore(%24 : memref<!tpu.dma_semaphore, #tpu.memory_space<semaphore_mem>>) src(%20 : memref<144x128xbf16, #tpu.memory_space<any>>) dst(%22 : memref<144x128xbf16, #tpu.memory_space<vmem>>)
    %25 = arith.index_cast %9 : i32 to index
    %c0 = arith.constant 0 : index
    %c0_10 = arith.constant 0 : index
    %26 = vector.load %arg10[%25, %c0, %c0_10] : memref<2x144x128xbf16, #tpu.memory_space<vmem>>, vector<1x144x128xbf16>
    %27 = vector.shape_cast %26 : vector<1x144x128xbf16> to vector<144x128xbf16>
    %cst = arith.constant 0.000000e+00 : f32
    %28 = vector.broadcast %cst : f32 to vector<96x128xf32>
    %29 = vector.extract_strided_slice %27 {offsets = [0, 0], sizes = [96, 128], strides = [1, 1]} : vector<144x128xbf16> to vector<96x128xbf16>
    %c0_11 = arith.constant 0 : index
    %c0_12 = arith.constant 0 : index
    %c0_13 = arith.constant 0 : index
    %30 = vector.load %arg3[%c0_11, %c0_12, %c0_13] : memref<9x128x128xbf16, #tpu.memory_space<vmem>>, vector<1x128x128xbf16>
    %31 = vector.shape_cast %30 : vector<1x128x128xbf16> to vector<128x128xbf16>
    %cst_14 = arith.constant dense<0.000000e+00> : vector<96x128xf32>
    %32 = tpu.matmul %29, %31, %cst_14 {dimension_numbers = #tpu.dot_dimension_numbers<[1], [0], [0], [1], [0, 0, 1, 1], [], []>} : vector<96x128xbf16>, vector<128x128xbf16>, vector<96x128xf32> -> vector<96x128xf32>
    %33 = arith.addf %28, %32 : vector<96x128xf32>
    %34 = vector.extract_strided_slice %27 {offsets = [1, 0], sizes = [96, 128], strides = [1, 1]} : vector<144x128xbf16> to vector<96x128xbf16>
    %c1 = arith.constant 1 : index
    %c0_15 = arith.constant 0 : index
    %c0_16 = arith.constant 0 : index
    %35 = vector.load %arg3[%c1, %c0_15, %c0_16] : memref<9x128x128xbf16, #tpu.memory_space<vmem>>, vector<1x128x128xbf16>
    %36 = vector.shape_cast %35 : vector<1x128x128xbf16> to vector<128x128xbf16>
    %cst_17 = arith.constant dense<0.000000e+00> : vector<96x128xf32>
    %37 = tpu.matmul %34, %36, %cst_17 {dimension_numbers = #tpu.dot_dimension_numbers<[1], [0], [0], [1], [0, 0, 1, 1], [], []>} : vector<96x128xbf16>, vector<128x128xbf16>, vector<96x128xf32> -> vector<96x128xf32>
    %38 = arith.addf %33, %37 : vector<96x128xf32>
    %39 = vector.extract_strided_slice %27 {offsets = [2, 0], sizes = [96, 128], strides = [1, 1]} : vector<144x128xbf16> to vector<96x128xbf16>
    %c2 = arith.constant 2 : index
    %c0_18 = arith.constant 0 : index
    %c0_19 = arith.constant 0 : index
    %40 = vector.load %arg3[%c2, %c0_18, %c0_19] : memref<9x128x128xbf16, #tpu.memory_space<vmem>>, vector<1x128x128xbf16>
    %41 = vector.shape_cast %40 : vector<1x128x128xbf16> to vector<128x128xbf16>
    %cst_20 = arith.constant dense<0.000000e+00> : vector<96x128xf32>
    %42 = tpu.matmul %39, %41, %cst_20 {dimension_numbers = #tpu.dot_dimension_numbers<[1], [0], [0], [1], [0, 0, 1, 1], [], []>} : vector<96x128xbf16>, vector<128x128xbf16>, vector<96x128xf32> -> vector<96x128xf32>
    %43 = arith.addf %38, %42 : vector<96x128xf32>
    %44 = vector.extract_strided_slice %27 {offsets = [16, 0], sizes = [96, 128], strides = [1, 1]} : vector<144x128xbf16> to vector<96x128xbf16>
    %c3 = arith.constant 3 : index
    %c0_21 = arith.constant 0 : index
    %c0_22 = arith.constant 0 : index
    %45 = vector.load %arg3[%c3, %c0_21, %c0_22] : memref<9x128x128xbf16, #tpu.memory_space<vmem>>, vector<1x128x128xbf16>
    %46 = vector.shape_cast %45 : vector<1x128x128xbf16> to vector<128x128xbf16>
    %cst_23 = arith.constant dense<0.000000e+00> : vector<96x128xf32>
    %47 = tpu.matmul %44, %46, %cst_23 {dimension_numbers = #tpu.dot_dimension_numbers<[1], [0], [0], [1], [0, 0, 1, 1], [], []>} : vector<96x128xbf16>, vector<128x128xbf16>, vector<96x128xf32> -> vector<96x128xf32>
    %48 = arith.addf %43, %47 : vector<96x128xf32>
    %49 = vector.extract_strided_slice %27 {offsets = [17, 0], sizes = [96, 128], strides = [1, 1]} : vector<144x128xbf16> to vector<96x128xbf16>
    %c4 = arith.constant 4 : index
    %c0_24 = arith.constant 0 : index
    %c0_25 = arith.constant 0 : index
    %50 = vector.load %arg3[%c4, %c0_24, %c0_25] : memref<9x128x128xbf16, #tpu.memory_space<vmem>>, vector<1x128x128xbf16>
    %51 = vector.shape_cast %50 : vector<1x128x128xbf16> to vector<128x128xbf16>
    %cst_26 = arith.constant dense<0.000000e+00> : vector<96x128xf32>
    %52 = tpu.matmul %49, %51, %cst_26 {dimension_numbers = #tpu.dot_dimension_numbers<[1], [0], [0], [1], [0, 0, 1, 1], [], []>} : vector<96x128xbf16>, vector<128x128xbf16>, vector<96x128xf32> -> vector<96x128xf32>
    %53 = arith.addf %48, %52 : vector<96x128xf32>
    %54 = vector.extract_strided_slice %27 {offsets = [18, 0], sizes = [96, 128], strides = [1, 1]} : vector<144x128xbf16> to vector<96x128xbf16>
    %c5 = arith.constant 5 : index
    %c0_27 = arith.constant 0 : index
    %c0_28 = arith.constant 0 : index
    %55 = vector.load %arg3[%c5, %c0_27, %c0_28] : memref<9x128x128xbf16, #tpu.memory_space<vmem>>, vector<1x128x128xbf16>
    %56 = vector.shape_cast %55 : vector<1x128x128xbf16> to vector<128x128xbf16>
    %cst_29 = arith.constant dense<0.000000e+00> : vector<96x128xf32>
    %57 = tpu.matmul %54, %56, %cst_29 {dimension_numbers = #tpu.dot_dimension_numbers<[1], [0], [0], [1], [0, 0, 1, 1], [], []>} : vector<96x128xbf16>, vector<128x128xbf16>, vector<96x128xf32> -> vector<96x128xf32>
    %58 = arith.addf %53, %57 : vector<96x128xf32>
    %59 = vector.extract_strided_slice %27 {offsets = [32, 0], sizes = [96, 128], strides = [1, 1]} : vector<144x128xbf16> to vector<96x128xbf16>
    %c6 = arith.constant 6 : index
    %c0_30 = arith.constant 0 : index
    %c0_31 = arith.constant 0 : index
    %60 = vector.load %arg3[%c6, %c0_30, %c0_31] : memref<9x128x128xbf16, #tpu.memory_space<vmem>>, vector<1x128x128xbf16>
    %61 = vector.shape_cast %60 : vector<1x128x128xbf16> to vector<128x128xbf16>
    %cst_32 = arith.constant dense<0.000000e+00> : vector<96x128xf32>
    %62 = tpu.matmul %59, %61, %cst_32 {dimension_numbers = #tpu.dot_dimension_numbers<[1], [0], [0], [1], [0, 0, 1, 1], [], []>} : vector<96x128xbf16>, vector<128x128xbf16>, vector<96x128xf32> -> vector<96x128xf32>
    %63 = arith.addf %58, %62 : vector<96x128xf32>
    %64 = vector.extract_strided_slice %27 {offsets = [33, 0], sizes = [96, 128], strides = [1, 1]} : vector<144x128xbf16> to vector<96x128xbf16>
    %c7 = arith.constant 7 : index
    %c0_33 = arith.constant 0 : index
    %c0_34 = arith.constant 0 : index
    %65 = vector.load %arg3[%c7, %c0_33, %c0_34] : memref<9x128x128xbf16, #tpu.memory_space<vmem>>, vector<1x128x128xbf16>
    %66 = vector.shape_cast %65 : vector<1x128x128xbf16> to vector<128x128xbf16>
    %cst_35 = arith.constant dense<0.000000e+00> : vector<96x128xf32>
    %67 = tpu.matmul %64, %66, %cst_35 {dimension_numbers = #tpu.dot_dimension_numbers<[1], [0], [0], [1], [0, 0, 1, 1], [], []>} : vector<96x128xbf16>, vector<128x128xbf16>, vector<96x128xf32> -> vector<96x128xf32>
    %68 = arith.addf %63, %67 : vector<96x128xf32>
    %69 = vector.extract_strided_slice %27 {offsets = [34, 0], sizes = [96, 128], strides = [1, 1]} : vector<144x128xbf16> to vector<96x128xbf16>
    %c8 = arith.constant 8 : index
    %c0_36 = arith.constant 0 : index
    %c0_37 = arith.constant 0 : index
    %70 = vector.load %arg3[%c8, %c0_36, %c0_37] : memref<9x128x128xbf16, #tpu.memory_space<vmem>>, vector<1x128x128xbf16>
    %71 = vector.shape_cast %70 : vector<1x128x128xbf16> to vector<128x128xbf16>
    %cst_38 = arith.constant dense<0.000000e+00> : vector<96x128xf32>
    %72 = tpu.matmul %69, %71, %cst_38 {dimension_numbers = #tpu.dot_dimension_numbers<[1], [0], [0], [1], [0, 0, 1, 1], [], []>} : vector<96x128xbf16>, vector<128x128xbf16>, vector<96x128xf32> -> vector<96x128xf32>
    %73 = arith.addf %68, %72 : vector<96x128xf32>
    %c0_39 = arith.constant 0 : index
    %c0_40 = arith.constant 0 : index
    %74 = vector.load %arg4[%c0_39, %c0_40] : memref<1x128xf32, #tpu.memory_space<vmem>>, vector<1x128xf32>
    %75 = vector.broadcast %74 : vector<1x128xf32> to vector<96x128xf32>
    %76 = arith.mulf %73, %75 : vector<96x128xf32>
    %c0_41 = arith.constant 0 : index
    %c0_42 = arith.constant 0 : index
    %77 = vector.load %arg5[%c0_41, %c0_42] : memref<1x128xf32, #tpu.memory_space<vmem>>, vector<1x128xf32>
    %78 = vector.broadcast %77 : vector<1x128xf32> to vector<96x128xf32>
    %79 = arith.addf %76, %78 : vector<96x128xf32>
    %cst_43 = arith.constant 0.00999999977 : f32
    %80 = vector.broadcast %cst_43 : f32 to vector<96x128xf32>
    %81 = arith.mulf %80, %79 : vector<96x128xf32>
    %82 = arith.maximumf %79, %81 : vector<96x128xf32>
    %83 = arith.truncf %82 : vector<96x128xf32> to vector<96x128xbf16>
    %c0_44 = arith.constant 0 : index
    %c0_45 = arith.constant 0 : index
    %84 = vector.load %arg11[%c0_44, %c0_45] : memref<112x128xbf16, #tpu.memory_space<vmem>>, vector<96x128xbf16>
    tpu.vector_store %arg11[%c0_44, %c0_45], %83 {strides = array<i32>} : memref<112x128xbf16, #tpu.memory_space<vmem>>, vector<96x128xbf16>,
    %cst_46 = arith.constant 0.000000e+00 : bf16
    %85 = vector.broadcast %cst_46 : bf16 to vector<16x128xbf16>
    %c96 = arith.constant 96 : index
    %c0_47 = arith.constant 0 : index
    %86 = vector.load %arg11[%c96, %c0_47] : memref<112x128xbf16, #tpu.memory_space<vmem>>, vector<16x128xbf16>
    tpu.vector_store %arg11[%c96, %c0_47], %85 {strides = array<i32>} : memref<112x128xbf16, #tpu.memory_space<vmem>>, vector<16x128xbf16>,
    %c0_48 = arith.constant 0 : index
    %c0_49 = arith.constant 0 : index
    %87 = vector.load %arg11[%c0_48, %c0_49] : memref<112x128xbf16, #tpu.memory_space<vmem>>, vector<112x128xbf16>
    %cst_50 = arith.constant 0.000000e+00 : f32
    %88 = vector.broadcast %cst_50 : f32 to vector<64x128xf32>
    %89 = vector.extract_strided_slice %87 {offsets = [0, 0], sizes = [64, 128], strides = [1, 1]} : vector<112x128xbf16> to vector<64x128xbf16>
    %c0_51 = arith.constant 0 : index
    %c0_52 = arith.constant 0 : index
    %c0_53 = arith.constant 0 : index
    %90 = vector.load %arg6[%c0_51, %c0_52, %c0_53] : memref<9x128x128xbf16, #tpu.memory_space<vmem>>, vector<1x128x128xbf16>
    %91 = vector.shape_cast %90 : vector<1x128x128xbf16> to vector<128x128xbf16>
    %cst_54 = arith.constant dense<0.000000e+00> : vector<64x128xf32>
    %92 = tpu.matmul %89, %91, %cst_54 {dimension_numbers = #tpu.dot_dimension_numbers<[1], [0], [0], [1], [0, 0, 1, 1], [], []>} : vector<64x128xbf16>, vector<128x128xbf16>, vector<64x128xf32> -> vector<64x128xf32>
    %93 = arith.addf %88, %92 : vector<64x128xf32>
    %94 = vector.extract_strided_slice %87 {offsets = [1, 0], sizes = [64, 128], strides = [1, 1]} : vector<112x128xbf16> to vector<64x128xbf16>
    %c1_55 = arith.constant 1 : index
    %c0_56 = arith.constant 0 : index
    %c0_57 = arith.constant 0 : index
    %95 = vector.load %arg6[%c1_55, %c0_56, %c0_57] : memref<9x128x128xbf16, #tpu.memory_space<vmem>>, vector<1x128x128xbf16>
    %96 = vector.shape_cast %95 : vector<1x128x128xbf16> to vector<128x128xbf16>
    %cst_58 = arith.constant dense<0.000000e+00> : vector<64x128xf32>
    %97 = tpu.matmul %94, %96, %cst_58 {dimension_numbers = #tpu.dot_dimension_numbers<[1], [0], [0], [1], [0, 0, 1, 1], [], []>} : vector<64x128xbf16>, vector<128x128xbf16>, vector<64x128xf32> -> vector<64x128xf32>
    %98 = arith.addf %93, %97 : vector<64x128xf32>
    %99 = vector.extract_strided_slice %87 {offsets = [2, 0], sizes = [64, 128], strides = [1, 1]} : vector<112x128xbf16> to vector<64x128xbf16>
    %c2_59 = arith.constant 2 : index
    %c0_60 = arith.constant 0 : index
    %c0_61 = arith.constant 0 : index
    %100 = vector.load %arg6[%c2_59, %c0_60, %c0_61] : memref<9x128x128xbf16, #tpu.memory_space<vmem>>, vector<1x128x128xbf16>
    %101 = vector.shape_cast %100 : vector<1x128x128xbf16> to vector<128x128xbf16>
    %cst_62 = arith.constant dense<0.000000e+00> : vector<64x128xf32>
    %102 = tpu.matmul %99, %101, %cst_62 {dimension_numbers = #tpu.dot_dimension_numbers<[1], [0], [0], [1], [0, 0, 1, 1], [], []>} : vector<64x128xbf16>, vector<128x128xbf16>, vector<64x128xf32> -> vector<64x128xf32>
    %103 = arith.addf %98, %102 : vector<64x128xf32>
    %104 = vector.extract_strided_slice %87 {offsets = [16, 0], sizes = [64, 128], strides = [1, 1]} : vector<112x128xbf16> to vector<64x128xbf16>
    %c3_63 = arith.constant 3 : index
    %c0_64 = arith.constant 0 : index
    %c0_65 = arith.constant 0 : index
    %105 = vector.load %arg6[%c3_63, %c0_64, %c0_65] : memref<9x128x128xbf16, #tpu.memory_space<vmem>>, vector<1x128x128xbf16>
    %106 = vector.shape_cast %105 : vector<1x128x128xbf16> to vector<128x128xbf16>
    %cst_66 = arith.constant dense<0.000000e+00> : vector<64x128xf32>
    %107 = tpu.matmul %104, %106, %cst_66 {dimension_numbers = #tpu.dot_dimension_numbers<[1], [0], [0], [1], [0, 0, 1, 1], [], []>} : vector<64x128xbf16>, vector<128x128xbf16>, vector<64x128xf32> -> vector<64x128xf32>
    %108 = arith.addf %103, %107 : vector<64x128xf32>
    %109 = vector.extract_strided_slice %87 {offsets = [17, 0], sizes = [64, 128], strides = [1, 1]} : vector<112x128xbf16> to vector<64x128xbf16>
    %c4_67 = arith.constant 4 : index
    %c0_68 = arith.constant 0 : index
    %c0_69 = arith.constant 0 : index
    %110 = vector.load %arg6[%c4_67, %c0_68, %c0_69] : memref<9x128x128xbf16, #tpu.memory_space<vmem>>, vector<1x128x128xbf16>
    %111 = vector.shape_cast %110 : vector<1x128x128xbf16> to vector<128x128xbf16>
    %cst_70 = arith.constant dense<0.000000e+00> : vector<64x128xf32>
    %112 = tpu.matmul %109, %111, %cst_70 {dimension_numbers = #tpu.dot_dimension_numbers<[1], [0], [0], [1], [0, 0, 1, 1], [], []>} : vector<64x128xbf16>, vector<128x128xbf16>, vector<64x128xf32> -> vector<64x128xf32>
    %113 = arith.addf %108, %112 : vector<64x128xf32>
    %114 = vector.extract_strided_slice %87 {offsets = [18, 0], sizes = [64, 128], strides = [1, 1]} : vector<112x128xbf16> to vector<64x128xbf16>
    %c5_71 = arith.constant 5 : index
    %c0_72 = arith.constant 0 : index
    %c0_73 = arith.constant 0 : index
    %115 = vector.load %arg6[%c5_71, %c0_72, %c0_73] : memref<9x128x128xbf16, #tpu.memory_space<vmem>>, vector<1x128x128xbf16>
    %116 = vector.shape_cast %115 : vector<1x128x128xbf16> to vector<128x128xbf16>
    %cst_74 = arith.constant dense<0.000000e+00> : vector<64x128xf32>
    %117 = tpu.matmul %114, %116, %cst_74 {dimension_numbers = #tpu.dot_dimension_numbers<[1], [0], [0], [1], [0, 0, 1, 1], [], []>} : vector<64x128xbf16>, vector<128x128xbf16>, vector<64x128xf32> -> vector<64x128xf32>
    %118 = arith.addf %113, %117 : vector<64x128xf32>
    %119 = vector.extract_strided_slice %87 {offsets = [32, 0], sizes = [64, 128], strides = [1, 1]} : vector<112x128xbf16> to vector<64x128xbf16>
    %c6_75 = arith.constant 6 : index
    %c0_76 = arith.constant 0 : index
    %c0_77 = arith.constant 0 : index
    %120 = vector.load %arg6[%c6_75, %c0_76, %c0_77] : memref<9x128x128xbf16, #tpu.memory_space<vmem>>, vector<1x128x128xbf16>
    %121 = vector.shape_cast %120 : vector<1x128x128xbf16> to vector<128x128xbf16>
    %cst_78 = arith.constant dense<0.000000e+00> : vector<64x128xf32>
    %122 = tpu.matmul %119, %121, %cst_78 {dimension_numbers = #tpu.dot_dimension_numbers<[1], [0], [0], [1], [0, 0, 1, 1], [], []>} : vector<64x128xbf16>, vector<128x128xbf16>, vector<64x128xf32> -> vector<64x128xf32>
    %123 = arith.addf %118, %122 : vector<64x128xf32>
    %124 = vector.extract_strided_slice %87 {offsets = [33, 0], sizes = [64, 128], strides = [1, 1]} : vector<112x128xbf16> to vector<64x128xbf16>
    %c7_79 = arith.constant 7 : index
    %c0_80 = arith.constant 0 : index
    %c0_81 = arith.constant 0 : index
    %125 = vector.load %arg6[%c7_79, %c0_80, %c0_81] : memref<9x128x128xbf16, #tpu.memory_space<vmem>>, vector<1x128x128xbf16>
    %126 = vector.shape_cast %125 : vector<1x128x128xbf16> to vector<128x128xbf16>
    %cst_82 = arith.constant dense<0.000000e+00> : vector<64x128xf32>
    %127 = tpu.matmul %124, %126, %cst_82 {dimension_numbers = #tpu.dot_dimension_numbers<[1], [0], [0], [1], [0, 0, 1, 1], [], []>} : vector<64x128xbf16>, vector<128x128xbf16>, vector<64x128xf32> -> vector<64x128xf32>
    %128 = arith.addf %123, %127 : vector<64x128xf32>
    %129 = vector.extract_strided_slice %87 {offsets = [34, 0], sizes = [64, 128], strides = [1, 1]} : vector<112x128xbf16> to vector<64x128xbf16>
    %c8_83 = arith.constant 8 : index
    %c0_84 = arith.constant 0 : index
    %c0_85 = arith.constant 0 : index
    %130 = vector.load %arg6[%c8_83, %c0_84, %c0_85] : memref<9x128x128xbf16, #tpu.memory_space<vmem>>, vector<1x128x128xbf16>
    %131 = vector.shape_cast %130 : vector<1x128x128xbf16> to vector<128x128xbf16>
    %cst_86 = arith.constant dense<0.000000e+00> : vector<64x128xf32>
    %132 = tpu.matmul %129, %131, %cst_86 {dimension_numbers = #tpu.dot_dimension_numbers<[1], [0], [0], [1], [0, 0, 1, 1], [], []>} : vector<64x128xbf16>, vector<128x128xbf16>, vector<64x128xf32> -> vector<64x128xf32>
    %133 = arith.addf %128, %132 : vector<64x128xf32>
    %c0_87 = arith.constant 0 : index
    %c0_88 = arith.constant 0 : index
    %134 = vector.load %arg7[%c0_87, %c0_88] : memref<1x128xf32, #tpu.memory_space<vmem>>, vector<1x128xf32>
    %135 = vector.broadcast %134 : vector<1x128xf32> to vector<64x128xf32>
    %136 = arith.mulf %133, %135 : vector<64x128xf32>
    %c0_89 = arith.constant 0 : index
    %c0_90 = arith.constant 0 : index
    %137 = vector.load %arg8[%c0_89, %c0_90] : memref<1x128xf32, #tpu.memory_space<vmem>>, vector<1x128xf32>
    %138 = vector.broadcast %137 : vector<1x128xf32> to vector<64x128xf32>
    %139 = arith.addf %136, %138 : vector<64x128xf32>
    %cst_91 = arith.constant 0.00999999977 : f32
    %140 = vector.broadcast %cst_91 : f32 to vector<64x128xf32>
    %141 = arith.mulf %140, %139 : vector<64x128xf32>
    %142 = arith.maximumf %139, %141 : vector<64x128xf32>
    %143 = vector.shape_cast %142 : vector<64x128xf32> to vector<4x16x128xf32>
    %144 = arith.truncf %143 : vector<4x16x128xf32> to vector<4x16x128xbf16>
    %c0_92 = arith.constant 0 : index
    %c0_93 = arith.constant 0 : index
    %c0_94 = arith.constant 0 : index
    %c0_95 = arith.constant 0 : index
    %145 = vector.load %arg9[%c0_92, %c0_93, %c0_94, %c0_95] : memref<1x4x16x128xbf16, #tpu.memory_space<vmem>>, vector<1x4x16x128xbf16>
    %146 = vector.shape_cast %145 : vector<1x4x16x128xbf16> to vector<4x16x128xbf16>
    %147 = vector.shape_cast %144 : vector<4x16x128xbf16> to vector<1x4x16x128xbf16>
    tpu.vector_store %arg9[%c0_92, %c0_93, %c0_94, %c0_95], %147 {strides = array<i32>} : memref<1x4x16x128xbf16, #tpu.memory_space<vmem>>, vector<1x4x16x128xbf16>,
    return
  }
  func.func @transform_1(%arg0: i32, %arg1: i32) -> (i32, i32, i32) {
    %c0_i32 = arith.constant 0 : i32
    %c0_i32_0 = arith.constant 0 : i32
    %c0_i32_1 = arith.constant 0 : i32
    %c0_i32_2 = arith.constant 0 : i32
    return %c0_i32, %c0_i32_0, %c0_i32_1 : i32, i32, i32
  }
  func.func @transform_2(%arg0: i32, %arg1: i32) -> (i32, i32) {
    %c0_i32 = arith.constant 0 : i32
    %c0_i32_0 = arith.constant 0 : i32
    %c0_i32_1 = arith.constant 0 : i32
    return %c0_i32, %c0_i32_0 : i32, i32
  }
  func.func @transform_3(%arg0: i32, %arg1: i32) -> (i32, i32) {
    %c0_i32 = arith.constant 0 : i32
    %c0_i32_0 = arith.constant 0 : i32
    %c0_i32_1 = arith.constant 0 : i32
    return %c0_i32, %c0_i32_0 : i32, i32
  }
  func.func @transform_4(%arg0: i32, %arg1: i32) -> (i32, i32, i32) {
    %c0_i32 = arith.constant 0 : i32
    %c0_i32_0 = arith.constant 0 : i32
    %c0_i32_1 = arith.constant 0 : i32
    %c0_i32_2 = arith.constant 0 : i32
    return %c0_i32, %c0_i32_0, %c0_i32_1 : i32, i32, i32
  }
  func.func @transform_5(%arg0: i32, %arg1: i32) -> (i32, i32) {
    %c0_i32 = arith.constant 0 : i32
    %c0_i32_0 = arith.constant 0 : i32
    %c0_i32_1 = arith.constant 0 : i32
    return %c0_i32, %c0_i32_0 : i32, i32
  }
  func.func @transform_6(%arg0: i32, %arg1: i32) -> (i32, i32) {
    %c0_i32 = arith.constant 0 : i32
    %c0_i32_0 = arith.constant 0 : i32
    %c0_i32_1 = arith.constant 0 : i32
    return %c0_i32, %c0_i32_0 : i32, i32
  }
  func.func @transform_7(%arg0: i32, %arg1: i32) -> (i32, i32, i32, i32) {
    %c0_i32 = arith.constant 0 : i32
    %c0_i32_0 = arith.constant 0 : i32
    %c0_i32_1 = arith.constant 0 : i32
    return %arg0, %arg1, %c0_i32, %c0_i32_0 : i32, i32, i32, i32
  }
}

</mosaic_0001>

<bundles_post_ra>
// kernel: double_conv.1
= control target key start
LH: loop header
LB: loop body
LE: loop exit
PB: predicated region body
PF: predicated region fallthrough
CT: control target
= control target key end

     0   :  { %s4171_s24 = smov 0   ;;  %s4173_s25 = smov 0   ;;  %s5123_s0 = inlined_call_operand.vmem [shape: bf16[2,272,128], index: 0, kind: input, shape index: {}]   ;;  %s5124_s1 = inlined_call_operand.vmem [shape: bf16[9,128,128], index: 1, kind: input, shape index: {}]   ;;  %s5125_s2 = inlined_call_operand.vmem [shape: f32[1,128], index: 2, kind: input, shape index: {}]   ;;  %s5126_s3 = inlined_call_operand.vmem [shape: f32[1,128], index: 3, kind: input, shape index: {}]   ;;  %s5127_s4 = inlined_call_operand.vmem [shape: bf16[9,128,128], index: 4, kind: input, shape index: {}]   ;;  %s5128_s5 = inlined_call_operand.vmem [shape: f32[1,128], index: 5, kind: input, shape index: {}]   ;;  %s5129_s6 = inlined_call_operand.vmem [shape: f32[1,128], index: 6, kind: input, shape index: {}]   ;;  %s5130_s7 = inlined_call_operand.vmem [shape: bf16[2,12,16,128], index: 7, kind: output, shape index: {}]  }
   0x1   :  { %s4175_s26 = smov 0   ;;  %s4177_s27 = smov 0  }
   0x2   :  { %s4179_s28 = smov 0  }
   0x3 LB: > { %s26_s29 = sadd.s32 1, %s4120_s26  ;;  %s29_s30 = sadd.s32 1, %s4124_s27  ;;  %s4128_s28 = sphi %s4179_s28, %s17_s28   ;;  %s4124_s27 = sphi %s4177_s27, %s5134_s27   ;;  %s4120_s26 = sphi %s4175_s26, %s5133_s26   ;;  %s4116_s25 = sphi %s4173_s25, %s5132_s25   ;;  %s4112_s24 = sphi %s4171_s24, %s5131_s24  }
   0x4   : > { %p27_p0 = scmp.ge.s32.totalorder %s26_s29, 3  ;;  %p2897_p1 = scmp.ge.s32.totalorder %s4128_s28, 1 }
   0x5   : > { %p217_p2 = scmp.lt.s32.totalorder %s4128_s28, 7 }
   0x6   : > { %s5136_s29 = smov (%p27_p0, %s26_s29), 0  ;;  %s5138_s30 = smov (!%p27_p0, %s29_s30), %s4124_s27 }
   0x7   : > { %p218_p3 = pnand %p2897_p1, %p217_p2  ;;  %p31_p4 = scmp.ge.s32.totalorder %s5138_s30, 2 }
   0x8   : > { %s2898_s8 = sshll.u32 (!%p218_p3), %s4112_s24, 2  ;;  %p248_p5 = scmp.lt.s32.totalorder (!%p218_p3), %s4116_s25, 1 }
   0x9   : > { %s5140_s30 = smov (%p31_p4, %s5138_s30), 0  ;;  %221 = sbr.rel (%p218_p3) target bundleno = 795 (0x31b), region = 44 }
   0xa   : > { %p250_p6 = scmp.lt.s32.totalorder (!%p218_p3), %s2898_s8, 11  ;;  %p259_p7 = scmp.lt.s32.totalorder (!%p218_p3), %s4112_s24, 0 }
   0xb   : > { %s260_s11 = ssub.s32 (!%p218_p3), 0, %s4112_s24  ;;  %p2904_p9 = scmp.ne.s32.totalorder (!%p218_p3), %s4112_s24, 0 }
   0xc   : > { %s2901_s13 = smin.u32 (!%p218_p3), %s4112_s24, %s260_s11 }
   0xd   : > { %s262_s15 = sand.u32 (!%p218_p3), 1, %s2901_s13  }
   0xe   : > { %s249_s9 = scalar_select %p248_p5, %s4116_s25, 1 }
   0xf   : > { %s5142_s8 = smov (!%p250_p6, %s2898_s8), 11  ;;  %s263_s17 = ssub.s32 0, %s262_s15 }
  0x10   : > { %s4042_s10 = smul.u32 24, %s249_s9  ;;  %s2899_s12 = sshll.u32 %s5142_s8, 1 }
  0x11   : > { %s5144_s17 = smov (!%p259_p7, %s263_s17), %s262_s15  ;;  %274 = sbr.rel (%p2904_p9) target bundleno = 37 (0x25), region = 48 }
  0x12   : > { %s254_s14 = sadd.s32 %s4042_s10, %s2899_s12  ;;  %p2903_p8 = scmp.lt.s32.totalorder %s5144_s17, 0 }
  0x13   : > { %s2900_s16 = sshll.u32 %s254_s14, 2  ;;  %s269_s21 = sadd.s32 2, %s5144_s17 }
  0x14   : > { %s4214_s20 = scalar_lea.vmem %s5130_s7, %s2900_s16  ;;  %s5146_s21 = smov (!%p2903_p8, %s269_s21), %s5144_s17 }
  0x15   : > { %s2905_s22 = sshll.u32 (!%p2904_p9), %s4112_s24, 6  ;;  %s278_s23 = smul.u32 (!%p2904_p9), 34, %s4116_s25 }
  0x16   : > { %s276_s8 = sshra.s32 %s2905_s22, 3  ;;  %s3789_s9 = smul.u32 72, %s5146_s21 }
  0x17   : > { %s279_s10 = sadd.s32 %s278_s23, %s276_s8  ;;  %s285_s16 = scalar_lea.sflag [#allocation4], %s5146_s21 }
  0x18   : > { %s2906_s11 = sshll.u32 %s279_s10, 2  ;;  %s284_s15 = scalar_lea.vmem [#allocation2], %s3789_s9 }
  0x19   : > { %s281_s14 = scalar_lea.vmem %s5123_s0, %s2906_s11 }
  0x1a   : > { %v296_v0 = vld [vmem:[%s281_s14] sm:$0xff]  ;;  %v298_v1 = vld [vmem:[%s281_s14 + $0x8] sm:$0xff]  ;;  %v300_v2 = vld [vmem:[%s281_s14 + $0x10] sm:$0xff] }
  0x1b   : > { %297 = vst [vmem:[%s284_s15] sm:$0xff] %v296_v0  ;;  %v302_v3 = vld [vmem:[%s281_s14 + $0x18] sm:$0xff]  ;;  %v304_v4 = vld [vmem:[%s281_s14 + $0x20] sm:$0xff]  ;;  %v306_v5 = vld [vmem:[%s281_s14 + $0x28] sm:$0xff] }
  0x1c   : > { %299 = vst [vmem:[%s284_s15 + $0x8] sm:$0xff] %v298_v1  ;;  %v308_v6 = vld [vmem:[%s281_s14 + $0x30] sm:$0xff]  ;;  %v310_v7 = vld [vmem:[%s281_s14 + $0x38] sm:$0xff]  ;;  %v312_v8 = vld [vmem:[%s281_s14 + $0x40] sm:$0xff] }
  0x1d   : > { %301 = vst [vmem:[%s284_s15 + $0x10] sm:$0xff] %v300_v2 }
  0x1e   : > { %303 = vst [vmem:[%s284_s15 + $0x18] sm:$0xff] %v302_v3 }
  0x1f   : > { %305 = vst [vmem:[%s284_s15 + $0x20] sm:$0xff] %v304_v4 }
  0x20   : > { %307 = vst [vmem:[%s284_s15 + $0x28] sm:$0xff] %v306_v5 }
  0x21   : > { %309 = vst [vmem:[%s284_s15 + $0x30] sm:$0xff] %v308_v6 }
  0x22   : > { %311 = vst [vmem:[%s284_s15 + $0x38] sm:$0xff] %v310_v7 }
  0x23   : > { %313 = vst [vmem:[%s284_s15 + $0x40] sm:$0xff] %v312_v8 }
  0x24   : > { %319 = vsyncadd %s285_s16, 1152 }
  0x25 PF: > { %s320_s17 = sadd.s32 1, %s4112_s24 }
  0x26   : > { %p2908_p10 = scmp.ge.s32.totalorder %s320_s17, 3 }
  0x27   : > { %s325_s18 = ssub.s32 (!%p2908_p10), 1, %s5146_s21  ;;  %s3790_s19 = sshll.u32 (!%p2908_p10), %s4112_s24, 6 }
  0x28   : > { %324 = sbr.rel (%p2908_p10) target bundleno = 57 (0x39), region = 71  ;;  %s3791_s22 = sadd.s32 (!%p2908_p10), 64, %s3790_s19 }
  0x29   : > { %s329_s23 = smul.u32 (!%p2908_p10), 34, %s4116_s25  ;;  %s327_s8 = sshra.s32 (!%p2908_p10), %s3791_s22, 3 }
  0x2a   : > { %s3792_s9 = smul.u32 (!%p2908_p10), 72, %s325_s18  ;;  %s336_s24 = scalar_lea.sflag (!%p2908_p10), [#allocation4], %s325_s18 }
  0x2b   : > { %s330_s10 = sadd.s32 (!%p2908_p10), %s329_s23, %s327_s8 }
  0x2c   : > { %s2910_s11 = sshll.u32 (!%p2908_p10), %s330_s10, 2  ;;  %s335_s15 = scalar_lea.vmem (!%p2908_p10), [#allocation2], %s3792_s9 }
  0x2d   : > { %s332_s14 = scalar_lea.vmem %s5123_s0, %s2910_s11 }
  0x2e   : > { %v347_v9 = vld [vmem:[%s332_s14] sm:$0xff]  ;;  %v349_v10 = vld [vmem:[%s332_s14 + $0x8] sm:$0xff]  ;;  %v351_v11 = vld [vmem:[%s332_s14 + $0x10] sm:$0xff] }
  0x2f   : > { %348 = vst [vmem:[%s335_s15] sm:$0xff] %v347_v9  ;;  %v353_v12 = vld [vmem:[%s332_s14 + $0x18] sm:$0xff]  ;;  %v355_v13 = vld [vmem:[%s332_s14 + $0x20] sm:$0xff]  ;;  %v357_v14 = vld [vmem:[%s332_s14 + $0x28] sm:$0xff] }
  0x30   : > { %350 = vst [vmem:[%s335_s15 + $0x8] sm:$0xff] %v349_v10  ;;  %v359_v15 = vld [vmem:[%s332_s14 + $0x30] sm:$0xff]  ;;  %v361_v16 = vld [vmem:[%s332_s14 + $0x38] sm:$0xff]  ;;  %v363_v17 = vld [vmem:[%s332_s14 + $0x40] sm:$0xff] }
  0x31   : > { %352 = vst [vmem:[%s335_s15 + $0x10] sm:$0xff] %v351_v11 }
  0x32   : > { %354 = vst [vmem:[%s335_s15 + $0x18] sm:$0xff] %v353_v12 }
  0x33   : > { %356 = vst [vmem:[%s335_s15 + $0x20] sm:$0xff] %v355_v13 }
  0x34   : > { %358 = vst [vmem:[%s335_s15 + $0x28] sm:$0xff] %v357_v14 }
  0x35   : > { %360 = vst [vmem:[%s335_s15 + $0x30] sm:$0xff] %v359_v15 }
  0x36   : > { %362 = vst [vmem:[%s335_s15 + $0x38] sm:$0xff] %v361_v16 }
  0x37   : > { %364 = vst [vmem:[%s335_s15 + $0x40] sm:$0xff] %v363_v17 }
  0x38   : > { %370 = vsyncadd %s336_s24, 1152 }
  0x39 PF: > { %s3793_s25 = smul.u32 72, %s5146_s21  ;;  %s375_s17 = scalar_lea.sflag [#allocation4], %s5146_s21 }
  0x3b   : > { %s4234_s16 = scalar_lea.vmem [#allocation2], %s3793_s25 }
  0x3c   : > { %4108 = dma.done.wait %s375_s17, 1152 }
  0x3d   : > { %4109 = vsyncadd %s375_s17, 4294966144  ;;  %v3815_v18 = vld [vmem:[%s5124_s1 + $0x78] sm:$0xff]  ;;  %v3814_v22 = vld [vmem:[%s5124_s1 + $0x70] sm:$0xff]  ;;  %vm463_vm0 = vsmask.f32 7424  ;;  %vm719_vm1 = vcmask 1046528  }
  0x3e   : > { %v3807_v19 = vld [vmem:[%s5124_s1 + $0x38] sm:$0xff]  ;;  %570 = vmatpush.bf16.msra.mxu0 %v3815_v18  ;;  %v3806_v23 = vld [vmem:[%s5124_s1 + $0x30] sm:$0xff]  ;;  %v3813_v26 = vld [vmem:[%s5124_s1 + $0x68] sm:$0xff] }
  0x3f   : > { %v3823_v20 = vld [vmem:[%s5124_s1 + $0xb8] sm:$0xff]  ;;  %663 = vmatpush.bf16.msra.mxu1 %v3807_v19  ;;  %v3822_v24 = vld [vmem:[%s5124_s1 + $0xb0] sm:$0xff]  ;;  %v3805_v27 = vld [vmem:[%s5124_s1 + $0x28] sm:$0xff] }
  0x40   : > { %v3831_v21 = vld [vmem:[%s5124_s1 + $0xf8] sm:$0xff]  ;;  %787 = vmatpush.bf16.msra.mxu2 %v3823_v20  ;;  %v3830_v25 = vld [vmem:[%s5124_s1 + $0xf0] sm:$0xff]  ;;  %v3821_v28 = vld [vmem:[%s5124_s1 + $0xa8] sm:$0xff] }
  0x41   : > { %907 = vmatpush.bf16.msra.mxu3 %v3831_v21  ;;  %v3829_v29 = vld [vmem:[%s5124_s1 + $0xe8] sm:$0xff]  ;;  %v3812_v30 = vld [vmem:[%s5124_s1 + $0x60] sm:$0xff]  ;;  %v3811_v34 = vld [vmem:[%s5124_s1 + $0x58] sm:$0xff] }
  0x42   : > { %571 = vmatpush.bf16.msra.mxu0 %v3814_v22  ;;  %v3804_v31 = vld [vmem:[%s5124_s1 + $0x20] sm:$0xff]  ;;  %v3803_v35 = vld [vmem:[%s5124_s1 + $0x18] sm:$0xff]  ;;  %v3810_v39 = vld [vmem:[%s5124_s1 + $0x50] sm:$0xff] }
  0x43   : > { %664 = vmatpush.bf16.msra.mxu1 %v3806_v23  ;;  %v3820_v32 = vld [vmem:[%s5124_s1 + $0xa0] sm:$0xff]  ;;  %v3819_v37 = vld [vmem:[%s5124_s1 + $0x98] sm:$0xff]  ;;  %v3802_v40 = vld [vmem:[%s5124_s1 + $0x10] sm:$0xff] }
  0x44   : > { %788 = vmatpush.bf16.msra.mxu2 %v3822_v24  ;;  %v3828_v33 = vld [vmem:[%s5124_s1 + $0xe0] sm:$0xff]  ;;  %v3827_v38 = vld [vmem:[%s5124_s1 + $0xd8] sm:$0xff]  ;;  %v3795_v41 = vld [vmem:[%s4234_s16 + $0x8] sm:$0xff] }
  0x45   : > { %908 = vmatpush.bf16.msra.mxu3 %v3830_v25  ;;  %v3794_v36 = vld [vmem:[%s4234_s16] sm:$0xff]  ;;  %v3818_v43 = vld [vmem:[%s5124_s1 + $0x90] sm:$0xff]  ;;  %v472_v49 = vshll.u32 %v3795_v41, 16  ;;  %v721_v59 = vrot.slane %v3795_v41, 1  ;;  %v3839_v60 = vld [vmem:[%s5124_s1 + $0x138] sm:$0xff]  ;;  %v476_v2 = vshrl.u32 %v3795_v41, 16 }
  0x46   : > { %572 = vmatpush.bf16.msra.mxu0 %v3813_v26  ;;  %v467_v42 = vshll.u32 %v3794_v36, 16  ;;  %v3826_v44 = vld [vmem:[%s5124_s1 + $0xd0] sm:$0xff]  ;;  %v3809_v45 = vld [vmem:[%s5124_s1 + $0x48] sm:$0xff]  ;;  %v465_v47 = vshrl.u32 %v3794_v36, 16  ;;  %v3808_v52 = vld [vmem:[%s5124_s1 + $0x40] sm:$0xff]  ;;  %v720_v58 = vrot.slane %v3794_v36, 1 }
  0x47   : > { %665 = vmatpush.bf16.msra.mxu1 %v3805_v27  ;;  %v3801_v46 = vld [vmem:[%s5124_s1 + $0x8] sm:$0xff]  ;;  %v3800_v53 = vld [vmem:[%s5124_s1] sm:$0xff]  ;;  %v474_v55 = vrot.slane %v472_v49, 1  ;;  %v3838_v63 = vld [vmem:[%s5124_s1 + $0x130] sm:$0xff] }
  0x48   : > { %789 = vmatpush.bf16.msra.mxu2 %v3821_v28  ;;  %v469_v48 = vrot.slane %v467_v42, 1  ;;  %v3817_v50 = vld [vmem:[%s5124_s1 + $0x88] sm:$0xff]  ;;  %v3816_v56 = vld [vmem:[%s5124_s1 + $0x80] sm:$0xff]  ;;  %v722_v62 = vsel %vm719_vm1, %v720_v58, %v721_v59  ;;  %v4344_v0 = vld [vmem:[%s4234_s16 + $0x10] sm:$0xff] }
  0x49   : > { %909 = vmatpush.bf16.msra.mxu3 %v3829_v29  ;;  %v3825_v51 = vld [vmem:[%s5124_s1 + $0xc8] sm:$0xff]  ;;  %v3824_v57 = vld [vmem:[%s5124_s1 + $0xc0] sm:$0xff]  ;;  %v480_v3 = vshll.u32 %v4344_v0, 16  ;;  %v478_v5 = vor.u32 %v476_v2, %v474_v55  ;;  %v723_v7 = vrot.slane %v4344_v0, 1  ;;  %v3835_v11 = vld [vmem:[%s5124_s1 + $0x118] sm:$0xff]  ;;  %v484_v13 = vshrl.u32 %v4344_v0, 16 }
  0x4a   : > { %573 = vmatpush.bf16.msra.mxu0 %v3812_v30  ;;  %v470_v54 = vor.u32 %v469_v48, %v465_v47  ;;  %v3837_v1 = vld [vmem:[%s5124_s1 + $0x128] sm:$0xff]  ;;  %v3836_v4 = vld [vmem:[%s5124_s1 + $0x120] sm:$0xff]  ;;  %v3834_v12 = vld [vmem:[%s5124_s1 + $0x110] sm:$0xff] }
  0x4b   : > { %666 = vmatpush.bf16.msra.mxu1 %v3804_v31  ;;  %v482_v6 = vrot.slane %v480_v3, 1  ;;  %v4358_v9 = vsel %vm719_vm1, %v721_v59, %v723_v7  ;;  %v4364_v10 = vld [vmem:[%s4234_s16 + $0x18] sm:$0xff]  ;;  %v4389_v21 = vld [vmem:[%s4234_s16 + $0x20] sm:$0xff]  ;;  %v3854_v24 = vld [vmem:[%s5124_s1 + $0x1b0] sm:$0xff] }
  0x4c   : > { %790 = vmatpush.bf16.msra.mxu2 %v3820_v32  ;;  %v475_v61 = vsel %vm463_vm0, %v470_v54, %v474_v55  ;;  %v488_v14 = vshll.u32 %v4364_v10, 16  ;;  %v725_v17 = vrot.slane %v4364_v10, 1  ;;  %v3855_v20 = vld [vmem:[%s5124_s1 + $0x1b8] sm:$0xff]  ;;  %v3833_v25 = vld [vmem:[%s5124_s1 + $0x108] sm:$0xff]  ;;  %v3846_v26 = vld [vmem:[%s5124_s1 + $0x170] sm:$0xff]  ;;  %v492_v28 = vshrl.u32 %v4364_v10, 16 }
  0x4d   : > { %910 = vmatpush.bf16.msra.mxu3 %v3828_v33  ;;  %v4355_v8 = vsel %vm463_vm0, %v478_v5, %v482_v6  ;;  %v486_v15 = vor.u32 %v484_v13, %v482_v6  ;;  %v3847_v22 = vld [vmem:[%s5124_s1 + $0x178] sm:$0xff]  ;;  %v3862_v27 = vld [vmem:[%s5124_s1 + $0x1f0] sm:$0xff]  ;;  %v496_v29 = vshll.u32 %v4389_v21, 16  ;;  %v3853_v30 = vld [vmem:[%s5124_s1 + $0x1a8] sm:$0xff]  ;;  %v500_v49 = vshrl.u32 %v4389_v21, 16 }
  0x4e   : > { %574 = vmatpush.bf16.msra.mxu0 %v3811_v34  ;;  %v490_v16 = vrot.slane %v488_v14, 1  ;;  %v4379_v19 = vsel %vm719_vm1, %v723_v7, %v725_v17  ;;  %v3863_v23 = vld [vmem:[%s5124_s1 + $0x1f8] sm:$0xff]  ;;  %v3845_v31 = vld [vmem:[%s5124_s1 + $0x168] sm:$0xff]  ;;  %v3842_v47 = vld [vmem:[%s5124_s1 + $0x150] sm:$0xff] }
  0x4f   : > { %667 = vmatpush.bf16.msra.mxu1 %v3803_v35  ;;  %v3861_v32 = vld [vmem:[%s5124_s1 + $0x1e8] sm:$0xff]  ;;  %v498_v34 = vrot.slane %v496_v29, 1  ;;  %v727_v35 = vrot.slane %v4389_v21, 1  ;;  %v3851_v42 = vld [vmem:[%s5124_s1 + $0x198] sm:$0xff]  ;;  %v3858_v48 = vld [vmem:[%s5124_s1 + $0x1d0] sm:$0xff] }
  0x50   : > { %791 = vmatpush.bf16.msra.mxu2 %v3819_v37  ;;  %v4376_v18 = vsel %vm463_vm0, %v486_v15, %v490_v16  ;;  %v494_v33 = vor.u32 %v492_v28, %v490_v16  ;;  %v3844_v37 = vld [vmem:[%s5124_s1 + $0x160] sm:$0xff]  ;;  %v3871_v2 = vld [vmem:[%s5124_s1 + $0x238] sm:$0xff]  ;;  %v3870_v3 = vld [vmem:[%s5124_s1 + $0x230] sm:$0xff] }
  0x51   : > { %911 = vmatpush.bf16.msra.mxu3 %v3827_v38  ;;  %v3860_v38 = vld [vmem:[%s5124_s1 + $0x1e0] sm:$0xff]  ;;  %v502_v54 = vor.u32 %v500_v49, %v498_v34  ;;  %v3869_v14 = vld [vmem:[%s5124_s1 + $0x228] sm:$0xff]  ;;  %v3866_v16 = vld [vmem:[%s5124_s1 + $0x210] sm:$0xff] }
  0x52   : > { %575 = vmatpush.bf16.msra.mxu0 %v3810_v39  ;;  %v4431_v39 = vsel %vm463_vm0, %v494_v33, %v498_v34  ;;  %v3848_v58 = vld [vmem:[%s5124_s1 + $0x180] sm:$0xff] }
  0x53   : > { %668 = vmatpush.bf16.msra.mxu1 %v3802_v40  ;;  %v4434_v40 = vsel %vm719_vm1, %v725_v17, %v727_v35  ;;  %v3840_v59 = vld [vmem:[%s5124_s1 + $0x140] sm:$0xff] }
  0x54   : > { %792 = vmatpush.bf16.msra.mxu2 %v3818_v43  ;;  %v3843_v43 = vld [vmem:[%s5124_s1 + $0x158] sm:$0xff]  ;;  %v3868_v15 = vld [vmem:[%s5124_s1 + $0x220] sm:$0xff] }
  0x55   : > { %912 = vmatpush.bf16.msra.mxu3 %v3826_v44  ;;  %v3859_v44 = vld [vmem:[%s5124_s1 + $0x1d8] sm:$0xff] }
  0x56   : > { %576 = vmatpush.bf16.msra.mxu0 %v3809_v45  ;;  %v3832_v45 = vld [vmem:[%s5124_s1 + $0x100] sm:$0xff] }
  0x57   : > { %669 = vmatpush.bf16.msra.mxu1 %v3801_v46  ;;  %v3850_v46 = vld [vmem:[%s5124_s1 + $0x190] sm:$0xff]  ;;  %v4557_v33 = vld [vmem:[%s4234_s16 + $0x38] sm:$0xff]  }
  0x58   : > { %793 = vmatpush.bf16.msra.mxu2 %v3817_v50 }
  0x59   : > { %913 = vmatpush.bf16.msra.mxu3 %v3825_v51  ;;  %v3849_v51 = vld [vmem:[%s5124_s1 + $0x188] sm:$0xff] }
  0x5a   : > { %577 = vmatpush.bf16.msra.mxu0 %v3808_v52  ;;  %v3841_v52 = vld [vmem:[%s5124_s1 + $0x148] sm:$0xff] }
  0x5b   : > { %670 = vmatpush.bf16.msra.mxu1 %v3800_v53  ;;  %v3857_v53 = vld [vmem:[%s5124_s1 + $0x1c8] sm:$0xff] }
  0x5c   : > { %794 = vmatpush.bf16.msra.mxu2 %v3816_v56 }
  0x5d   : > { %914 = vmatpush.bf16.msra.mxu3 %v3824_v57  ;;  %578 = vmatmul.bf16.vlgmr.msra.gmra.mxu0 %v475_v61  ;;  %v4479_v57 = vld [vmem:[%s4234_s16 + $0x30] sm:$0xff]  }
  0x5e   : > { %1041 = vmatpush.bf16.msrb.mxu0 %v3839_v60  ;;  %671 = vmatmul.bf16.vlgmr.msra.gmra.mxu1 %v3794_v36  ;;  %v3852_v36 = vld [vmem:[%s5124_s1 + $0x1a0] sm:$0xff] }
  0x5f   : > { %795 = vmatmul.bf16.vlgmr.msra.gmra.mxu2 %v722_v62  ;;  %1163 = vmatpush.bf16.msrb.mxu1 %v3847_v22  ;;  %v3856_v60 = vld [vmem:[%s5124_s1 + $0x1c0] sm:$0xff]  ;;  %v3950_v62 = vunpack.c.l.b16 %v4479_v57 }
  0x60   : > { %915 = vmatmul.bf16.vlgmr.msra.gmra.mxu3 %v3795_v41  ;;  %1283 = vmatpush.bf16.msrb.mxu2 %v3855_v20 }
  0x61   : > { %1417 = vmatpush.bf16.msrb.mxu3 %v3863_v23 }
  0x62   : > { %1042 = vmatpush.bf16.msrb.mxu0 %v3838_v63 }
  0x63   : > { %1164 = vmatpush.bf16.msrb.mxu1 %v3846_v26  ;;  %v3865_v26 = vld [vmem:[%s5124_s1 + $0x208] sm:$0xff] }
  0x64   : > { %1284 = vmatpush.bf16.msrb.mxu2 %v3854_v24  ;;  %v979_v24 = vshll.u32 %v4479_v57, 16 }
  0x65   : > { %1418 = vmatpush.bf16.msrb.mxu3 %v3862_v27 }
  0x66   : > { %1043 = vmatpush.bf16.msrb.mxu0 %v3837_v1  ;;  %v462_v1 = vpack.c.b16 %v3950_v62, %v3950_v62 }
  0x67   : > { %1165 = vmatpush.bf16.msrb.mxu1 %v3845_v31 }
  0x68   : > { %1285 = vmatpush.bf16.msrb.mxu2 %v3853_v30  ;;  %v512_v5 = vshll.u32 %v462_v1, 16 }
  0x69   : > { %1419 = vmatpush.bf16.msrb.mxu3 %v3861_v32 }
  0x6a   : > { %1044 = vmatpush.bf16.msrb.mxu0 %v3836_v4  ;;  %v514_v7 = vrot.slane %v512_v5, 1 }
  0x6b   : > { %1166 = vmatpush.bf16.msrb.mxu1 %v3844_v37 }
  0x6c   : > { %1286 = vmatpush.bf16.msrb.mxu2 %v3852_v36 }
  0x6d   : > { %583 = vmatmul.bf16.gmra.mxu0 %v4355_v8  ;;  %1420 = vmatpush.bf16.msrb.mxu3 %v3860_v38 }
  0x6e   : > { %676 = vmatmul.bf16.gmra.mxu1 %v3795_v41  ;;  %1045 = vmatpush.bf16.msrb.mxu0 %v3835_v11  ;;  %v4439_v41 = vld [vmem:[%s4234_s16 + $0x28] sm:$0xff]  ;;  %v731_v11 = vrot.slane %v462_v1, 1 }
  0x6f   : > { %800 = vmatmul.bf16.gmra.mxu2 %v4358_v9  ;;  %1167 = vmatpush.bf16.msrb.mxu1 %v3843_v43  ;;  %v504_v50 = vshll.u32 %v4439_v41, 16  ;;  %v4476_v56 = vrot.slane %v4439_v41, 1  ;;  %v508_v4 = vshrl.u32 %v4439_v41, 16  ;;  %v1355_v43 = vshll.u32 %v4557_v33, 16 }
  0x70   : > { %920 = vmatmul.bf16.gmra.mxu3 %v4344_v0  ;;  %1287 = vmatpush.bf16.msrb.mxu2 %v3851_v42  ;;  %v983_v42 = vshrl.u32 %v4479_v57, 16 }
  0x71   : > { %1421 = vmatpush.bf16.msrb.mxu3 %v3859_v44  ;;  %v506_v55 = vrot.slane %v504_v50, 1  ;;  %v4496_v63 = vsel %vm719_vm1, %v727_v35, %v4476_v56  ;;  %v732_v13 = vsel %vm719_vm1, %v4476_v56, %v731_v11  ;;  %v4571_v44 = vrot.slane %v4479_v57, 1 }
  0x72   : > { %1046 = vmatpush.bf16.msrb.mxu0 %v3834_v12 }
  0x73   : > { %1168 = vmatpush.bf16.msrb.mxu1 %v3842_v47  ;;  %v4491_v61 = vsel %vm463_vm0, %v502_v54, %v506_v55  ;;  %v510_v6 = vor.u32 %v508_v4, %v506_v55  ;;  %v396_v47 = vld [vmem:[%s4234_s16 + $0x40] sm:$0xf]  ;;  %v1359_v4 = vshrl.u32 %v4557_v33, 16 }
  0x74   : > { %1288 = vmatpush.bf16.msrb.mxu2 %v3850_v46  ;;  %v1357_v46 = vrot.slane %v1355_v43, 1 }
  0x75   : > { %1422 = vmatpush.bf16.msrb.mxu3 %v3858_v48  ;;  %v515_v12 = vsel %vm463_vm0, %v510_v6, %v514_v7 }
  0x76   : > { %1047 = vmatpush.bf16.msrb.mxu0 %v3833_v25 }
  0x77   : > { %1169 = vmatpush.bf16.msrb.mxu1 %v3841_v52  ;;  %v4581_v52 = vsel %vm719_vm1, %v4476_v56, %v4571_v44 }
  0x78   : > { %1289 = vmatpush.bf16.msrb.mxu2 %v3849_v51 }
  0x79   : > { %1423 = vmatpush.bf16.msrb.mxu3 %v3857_v53  ;;  %v3954_v53 = vunpack.c.l.b16 %v4557_v33 }
  0x7a   : > { %1048 = vmatpush.bf16.msrb.mxu0 %v3832_v45 }
  0x7b   : > { %1170 = vmatpush.bf16.msrb.mxu1 %v3840_v59  ;;  %v977_v59 = vpack.c.b16 %v3954_v53, %v3954_v53 }
  0x7c   : > { %1290 = vmatpush.bf16.msrb.mxu2 %v3848_v58  ;;  %v1352_v58 = vunpack.c.l.b16 %v396_v47 }
  0x7d   : > { %588 = vmatmul.bf16.gmra.mxu0 %v4376_v18  ;;  %1424 = vmatpush.bf16.msrb.mxu3 %v3856_v60  ;;  %v1111_v11 = vrot.slane %v977_v59, 1 }
  0x7e   : > { %681 = vmatmul.bf16.gmra.mxu1 %v4344_v0  ;;  %1539 = vmatpush.bf16.msra.mxu0 %v3871_v2  ;;  %v4587_v60 = vpack.c.b16 %v1352_v58, %v1352_v58 }
  0x7f   : > { %805 = vmatmul.bf16.gmra.mxu2 %v4379_v19 }
  0x80   : > { %925 = vmatmul.bf16.gmra.mxu3 %v4364_v10  ;;  %v1363_v5 = vshll.u32 %v4587_v60, 16 }
  0x82   : > { %1540 = vmatpush.bf16.msra.mxu0 %v3870_v3  ;;  %v987_v3 = vshll.u32 %v977_v59, 16 }
  0x84   : > { %v989_v7 = vrot.slane %v987_v3, 1 }
  0x86   : > { %1541 = vmatpush.bf16.msra.mxu0 %v3869_v14 }
  0x8a   : > { %1542 = vmatpush.bf16.msra.mxu0 %v3868_v15 }
  0x8d   : > { %593 = vmatmul.bf16.gmra.mxu0 %v4431_v39 }
  0x8e   : > { %686 = vmatmul.bf16.gmra.mxu1 %v4364_v10 }
  0x8f   : > { %810 = vmatmul.bf16.gmra.mxu2 %v4434_v40 }
  0x90   : > { %930 = vmatmul.bf16.gmra.mxu3 %v4389_v21 }
  0x9d   : > { %598 = vmatmul.bf16.gmra.mxu0 %v4491_v61 }
  0x9e   : > { %691 = vmatmul.bf16.gmra.mxu1 %v4389_v21 }
  0x9f   : > { %815 = vmatmul.bf16.gmra.mxu2 %v4496_v63 }
  0xa0   : > { %935 = vmatmul.bf16.gmra.mxu3 %v4439_v41 }
  0xad   : > { %603 = vmatmul.bf16.gmra.mxu0 %v515_v12  ;;  %v1365_v12 = vrot.slane %v1363_v5, 1  ;;  %v1485_v5 = vrot.slane %v4557_v33, 1 }
  0xae   : > { %696 = vmatmul.bf16.gmra.mxu1 %v4439_v41 }
  0xaf   : > { %820 = vmatmul.bf16.gmra.mxu2 %v732_v13 }
  0xb0   : > { %940 = vmatmul.bf16.gmra.mxu3 %v4479_v57 }
  0xbd   : > { %1049 = vmatmul.bf16.vlgmr.msrb.gmra.mxu0 %v4355_v8  ;;  %v3867_v8 = vld [vmem:[%s5124_s1 + $0x218] sm:$0xff] }
  0xbe   : > { %1171 = vmatmul.bf16.vlgmr.msrb.gmra.mxu1 %v4358_v9  ;;  %1543 = vmatpush.bf16.msra.mxu0 %v3867_v8 }
  0xbf   : > { %1291 = vmatmul.bf16.vlgmr.msrb.gmra.mxu2 %v4344_v0 }
  0xc0   : > { %1425 = vmatmul.bf16.vlgmr.msrb.gmra.mxu3 %v4376_v18 }
  0xc2   : > { %1544 = vmatpush.bf16.msra.mxu0 %v3866_v16 }
  0xc6   : > { %1545 = vmatpush.bf16.msra.mxu0 %v3865_v26 }
  0xcd   : > { %1054 = vmatmul.bf16.gmra.mxu0 %v4376_v18 }
  0xce   : > { %1176 = vmatmul.bf16.gmra.mxu1 %v4379_v19 }
  0xcf   : > { %1296 = vmatmul.bf16.gmra.mxu2 %v4364_v10 }
  0xd0   : > { %1430 = vmatmul.bf16.gmra.mxu3 %v4431_v39 }
  0xda   : > { %v579_v0 = vpop.f32.mrf.mxu0 }
  0xdb   : > { %v672_v9 = vpop.f32.mrf.mxu1 }
  0xdc   : > { %v673_v17 = vadd.f32 %v672_v9, %v579_v0  ;;  %v1112_v9 = vsel %vm719_vm1, %v4571_v44, %v1111_v11  ;;  %v1486_v11 = vsel %vm719_vm1, %v4571_v44, %v1485_v5 }
  0xdd   : > { %1059 = vmatmul.bf16.gmra.mxu0 %v4431_v39  ;;  %v3864_v39 = vld [vmem:[%s5124_s1 + $0x200] sm:$0xff] }
  0xde   : > { %1181 = vmatmul.bf16.gmra.mxu1 %v4434_v40  ;;  %1546 = vmatpush.bf16.msra.mxu0 %v3864_v39 }
  0xdf   : > { %1301 = vmatmul.bf16.gmra.mxu2 %v4389_v21  ;;  %v981_v21 = vrot.slane %v979_v24, 1 }
  0xe0   : > { %1435 = vmatmul.bf16.gmra.mxu3 %v4491_v61 }
  0xe1   : > { %v982_v32 = vsel %vm463_vm0, %v510_v6, %v981_v21  ;;  %v985_v45 = vor.u32 %v983_v42, %v981_v21 }
  0xe2   : > { %v796_v10 = vpop.f32.mrf.mxu2  ;;  %v4538_v22 = vpop.f32.mrf.mxu0 }
  0xe3   : > { %v916_v18 = vpop.f32.mrf.mxu3  ;;  %v826_v20 = vadd.f32 %v796_v10, %v673_v17  ;;  %v4540_v23 = vpop.f32.mrf.mxu1  ;;  %v1358_v55 = vsel %vm463_vm0, %v985_v45, %v1357_v46  ;;  %v990_v0 = vsel %vm463_vm0, %v985_v45, %v989_v7 }
  0xe5   : > { %v4543_v25 = vadd.f32 %v916_v18, %v826_v20 }
  0xea   : > { %v4548_v27 = vpop.f32.mrf.mxu2  ;;  %v584_v29 = vpop.f32.mrf.mxu0 }
  0xeb   : > { %v4550_v28 = vpop.f32.mrf.mxu3  ;;  %v677_v30 = vpop.f32.mrf.mxu1 }
  0xec   : > { %v678_v31 = vadd.f32 %v677_v30, %v584_v29 }
  0xed   : > { %1064 = vmatmul.bf16.gmra.mxu0 %v4491_v61 }
  0xee   : > { %1186 = vmatmul.bf16.gmra.mxu1 %v4496_v63 }
  0xef   : > { %1306 = vmatmul.bf16.gmra.mxu2 %v4439_v41 }
  0xf0   : > { %1440 = vmatmul.bf16.gmra.mxu3 %v982_v32 }
  0xf2   : > { %v801_v34 = vpop.f32.mrf.mxu2  ;;  %v4559_v37 = vpop.f32.mrf.mxu0 }
  0xf3   : > { %v921_v35 = vpop.f32.mrf.mxu3  ;;  %v828_v36 = vadd.f32 %v801_v34, %v678_v31  ;;  %v4561_v38 = vpop.f32.mrf.mxu1 }
  0xf5   : > { %v4568_v41 = vadd.f32 %v921_v35, %v828_v36 }
  0xfa   : > { %v4574_v48 = vpop.f32.mrf.mxu2  ;;  %v589_v50 = vpop.f32.mrf.mxu0 }
  0xfb   : > { %v4576_v49 = vpop.f32.mrf.mxu3  ;;  %v682_v51 = vpop.f32.mrf.mxu1 }
  0xfc   : > { %v683_v54 = vadd.f32 %v682_v51, %v589_v50 }
  0xfd   : > { %1069 = vmatmul.bf16.gmra.mxu0 %v982_v32 }
  0xfe   : > { %1191 = vmatmul.bf16.gmra.mxu1 %v4581_v52 }
  0xff   : > { %1311 = vmatmul.bf16.gmra.mxu2 %v4479_v57  ;;  %v1361_v57 = vor.u32 %v1359_v4, %v1357_v46 }
 0x100   : > { %1445 = vmatmul.bf16.gmra.mxu3 %v1358_v55 }
 0x101   : > { %v1366_v17 = vsel %vm463_vm0, %v1361_v57, %v1365_v12  ;;  %v1487_v57 = vrot.slane %v4587_v60, 1  ;;  %v3882_v60 = vld [vmem:[%s5127_s4 + $0x30] sm:$0xff] }
 0x102   : > { %v806_v61 = vpop.f32.mrf.mxu2  ;;  %v4589_v56 = vpop.f32.mrf.mxu0 }
 0x103   : > { %v926_v62 = vpop.f32.mrf.mxu3  ;;  %v830_v1 = vadd.f32 %v806_v61, %v683_v54  ;;  %v4591_v2 = vpop.f32.mrf.mxu1  ;;  %v1488_v12 = vsel %vm719_vm1, %v1485_v5, %v1487_v57 }
 0x105   : > { %v950_v6 = vadd.f32 %v926_v62, %v830_v1 }
 0x10a   : > { %v4595_v13 = vpop.f32.mrf.mxu2  ;;  %v594_v15 = vpop.f32.mrf.mxu0 }
 0x10b   : > { %v4597_v14 = vpop.f32.mrf.mxu3  ;;  %v687_v8 = vpop.f32.mrf.mxu1 }
 0x10c   : > { %v688_v16 = vadd.f32 %v687_v8, %v594_v15  ;;  %v3891_v8 = vld [vmem:[%s5127_s4 + $0x78] sm:$0xff] }
 0x10d   : > { %1074 = vmatmul.bf16.gmra.mxu0 %v990_v0  ;;  %4026 = vmatpush.bf16.msra.mxu3 %v3891_v8 }
 0x10e   : > { %1196 = vmatmul.bf16.gmra.mxu1 %v1112_v9 }
 0x10f   : > { %1316 = vmatmul.bf16.gmra.mxu2 %v4557_v33  ;;  %1829 = vmatpush.bf16.msra.mxu1 %v3891_v8 }
 0x110   : > { %1450 = vmatmul.bf16.gmra.mxu3 %v1366_v17 }
 0x112   : > { %v811_v10 = vpop.f32.mrf.mxu2  ;;  %v4604_v24 = vpop.f32.mrf.mxu0 }
 0x113   : > { %v931_v18 = vpop.f32.mrf.mxu3  ;;  %v832_v20 = vadd.f32 %v811_v10, %v688_v16  ;;  %v4606_v26 = vpop.f32.mrf.mxu1 }
 0x115   : > { %v952_v21 = vadd.f32 %v931_v18, %v832_v20  ;;  %v3881_v20 = vld [vmem:[%s5127_s4 + $0x28] sm:$0xff] }
 0x11a   : > { %v4608_v29 = vpop.f32.mrf.mxu2  ;;  %v599_v31 = vpop.f32.mrf.mxu0 }
 0x11b   : > { %v4610_v30 = vpop.f32.mrf.mxu3  ;;  %v692_v32 = vpop.f32.mrf.mxu1 }
 0x11c   : > { %v693_v34 = vadd.f32 %v692_v32, %v599_v31  ;;  %v3890_v31 = vld [vmem:[%s5127_s4 + $0x70] sm:$0xff] }
 0x11d   : > { %1547 = vmatmul.bf16.vlgmr.msra.gmra.mxu0 %v4379_v19  ;;  %4027 = vmatpush.bf16.msra.mxu3 %v3890_v31 }
 0x11e   : > { %1830 = vmatpush.bf16.msra.mxu1 %v3890_v31 }
 0x122   : > { %v816_v35 = vpop.f32.mrf.mxu2  ;;  %v4613_v42 = vpop.f32.mrf.mxu0 }
 0x123   : > { %v936_v36 = vpop.f32.mrf.mxu3  ;;  %v834_v39 = vadd.f32 %v816_v35, %v693_v34  ;;  %v4615_v43 = vpop.f32.mrf.mxu1  ;;  %v3880_v34 = vld [vmem:[%s5127_s4 + $0x20] sm:$0xff] }
 0x125   : > { %v954_v45 = vadd.f32 %v936_v36, %v834_v39  ;;  %v3879_v36 = vld [vmem:[%s5127_s4 + $0x18] sm:$0xff] }
 0x12a   : > { %v4617_v46 = vpop.f32.mrf.mxu2  ;;  %v604_v50 = vpop.f32.mrf.mxu0 }
 0x12b   : > { %v4619_v47 = vpop.f32.mrf.mxu3  ;;  %v697_v51 = vpop.f32.mrf.mxu1 }
 0x12c   : > { %v698_v53 = vadd.f32 %v697_v51, %v604_v50 }
 0x12d   : > { %1552 = vmatmul.bf16.gmra.mxu0 %v4434_v40 }
 0x132   : > { %v821_v54 = vpop.f32.mrf.mxu2  ;;  %v606_v58 = vpop.f32.mrf.mxu0 }
 0x133   : > { %v941_v55 = vpop.f32.mrf.mxu3  ;;  %v836_v19 = vadd.f32 %v821_v54, %v698_v53  ;;  %v699_v15 = vpop.f32.mrf.mxu1  ;;  %v3878_v53 = vld [vmem:[%s5127_s4 + $0x10] sm:$0xff] }
 0x134   : > { %v700_v50 = vadd.f32 %v699_v15, %v606_v58  ;;  %v3877_v58 = vld [vmem:[%s5127_s4 + $0x8] sm:$0xff]  ;;  %v3931_v15 = vld [vmem:[%s5127_s4 + $0x1b8] sm:$0xff] }
 0x135   : > { %v956_v59 = vadd.f32 %v941_v55, %v836_v19  ;;  %v675_v19 = vadd.f32 %v4540_v23, %v4538_v22  ;;  %v3876_v23 = vld [vmem:[%s5127_s4] sm:$0xff]  ;;  %2457 = vmatpush.bf16.msrb.mxu0 %v3931_v15 }
 0x13a   : > { %v1050_v61 = vpop.f32.mrf.mxu0  ;;  %v823_v44 = vpop.f32.mrf.mxu2 }
 0x13b   : > { %v4623_v62 = vadd.f32 %v1050_v61, %v4543_v25  ;;  %v943_v0 = vpop.f32.mrf.mxu3  ;;  %v1172_v9 = vpop.f32.mrf.mxu1  ;;  %v837_v54 = vadd.f32 %v823_v44, %v700_v50  ;;  %v3889_v61 = vld [vmem:[%s5127_s4 + $0x68] sm:$0xff] }
 0x13c   : > { %4028 = vmatpush.bf16.msra.mxu3 %v3889_v61  ;;  %1831 = vmatpush.bf16.msra.mxu1 %v3889_v61 }
 0x13d   : > { %1557 = vmatmul.bf16.gmra.mxu0 %v4496_v63  ;;  %v957_v5 = vadd.f32 %v943_v0, %v837_v54 }
 0x142   : > { %v4626_v1 = vpop.f32.mrf.mxu0  ;;  %v1292_v10 = vpop.f32.mrf.mxu2 }
 0x143   : > { %v1426_v18 = vpop.f32.mrf.mxu3  ;;  %v1174_v32 = vpop.f32.mrf.mxu1 }
 0x14a   : > { %v1055_v3 = vpop.f32.mrf.mxu0  ;;  %v1294_v35 = vpop.f32.mrf.mxu2 }
 0x14b   : > { %v4629_v4 = vadd.f32 %v1055_v3, %v4568_v41  ;;  %v3883_v41 = vld [vmem:[%s5127_s4 + $0x38] sm:$0xff]  ;;  %v1428_v39 = vpop.f32.mrf.mxu3  ;;  %v1177_v55 = vpop.f32.mrf.mxu1 }
 0x14c   : > { %1910 = vmatpush.bf16.msra.mxu2 %v3883_v41 }
 0x14d   : > { %1562 = vmatmul.bf16.gmra.mxu0 %v4581_v52  ;;  %v1204_v50 = vadd.f32 %v1177_v55, %v4629_v4 }
 0x150   : > { %1911 = vmatpush.bf16.msra.mxu2 %v3882_v60 }
 0x152   : > { %v4632_v40 = vpop.f32.mrf.mxu0  ;;  %v1297_v3 = vpop.f32.mrf.mxu2 }
 0x153   : > { %v1431_v22 = vpop.f32.mrf.mxu3  ;;  %v1324_v61 = vadd.f32 %v1297_v3, %v1204_v50 }
 0x154   : > { %1912 = vmatpush.bf16.msra.mxu2 %v3881_v20 }
 0x155   : > { %v1458_v3 = vadd.f32 %v1431_v22, %v1324_v61  ;;  %v3904_v61 = vld [vmem:[%s5127_s4 + $0xe0] sm:$0xff] }
 0x158   : > { %1913 = vmatpush.bf16.msra.mxu2 %v3880_v34 }
 0x15a   : > { %v1060_v7 = vpop.f32.mrf.mxu0  ;;  %v1299_v8 = vpop.f32.mrf.mxu2 }
 0x15b   : > { %v4637_v25 = vadd.f32 %v1060_v7, %v950_v6  ;;  %v1433_v20 = vpop.f32.mrf.mxu3 }
 0x15c   : > { %1914 = vmatpush.bf16.msra.mxu2 %v3879_v36 }
 0x15d   : > { %1567 = vmatmul.bf16.gmra.mxu0 %v1486_v11  ;;  %v1202_v11 = vadd.f32 %v1172_v9, %v4623_v62  ;;  %v3888_v62 = vld [vmem:[%s5127_s4 + $0x60] sm:$0xff] }
 0x15e   : > { %4029 = vmatpush.bf16.msra.mxu3 %v3888_v62  ;;  %1832 = vmatpush.bf16.msra.mxu1 %v3888_v62  ;;  %v3926_v62 = vld [vmem:[%s5127_s4 + $0x190] sm:$0xff] }
 0x160   : > { %1915 = vmatpush.bf16.msra.mxu2 %v3878_v53 }
 0x162   : > { %v4639_v63 = vpop.f32.mrf.mxu0 }
 0x164   : > { %1916 = vmatpush.bf16.msra.mxu2 %v3877_v58 }
 0x168   : > { %1917 = vmatpush.bf16.msra.mxu2 %v3876_v23  ;;  %v3884_v23 = vld [vmem:[%s5127_s4 + $0x40] sm:$0xff] }
 0x16a   : > { %v1065_v52 = vpop.f32.mrf.mxu0 }
 0x16b   : > { %v4646_v33 = vadd.f32 %v1065_v52, %v952_v21  ;;  %v1322_v52 = vadd.f32 %v1292_v10, %v1202_v11  ;;  %v3887_v10 = vld [vmem:[%s5127_s4 + $0x58] sm:$0xff] }
 0x16c   : > { %1833 = vmatpush.bf16.msra.mxu1 %v3887_v10  ;;  %4030 = vmatpush.bf16.msra.mxu3 %v3887_v10 }
 0x16d   : > { %1572 = vmatmul.bf16.gmra.mxu0 %v1488_v12  ;;  %v1179_v12 = vpop.f32.mrf.mxu1  ;;  %v1456_v44 = vadd.f32 %v1426_v18, %v1322_v52  ;;  %v680_v18 = vadd.f32 %v4561_v38, %v4559_v37  ;;  %v3886_v37 = vld [vmem:[%s5127_s4 + $0x50] sm:$0xff] }
 0x16f   : > { %v829_v34 = vadd.f32 %v4574_v48, %v680_v18  ;;  %v3906_v18 = vld [vmem:[%s5127_s4 + $0xf0] sm:$0xff] }
 0x170   : > { %1834 = vmatpush.bf16.msra.mxu1 %v3886_v37  ;;  %4031 = vmatpush.bf16.msra.mxu3 %v3886_v37 }
 0x171   : > { %v949_v48 = vadd.f32 %v4576_v49, %v829_v34  ;;  %v1436_v49 = vpop.f32.mrf.mxu3 }
 0x172   : > { %v4648_v6 = vpop.f32.mrf.mxu0 }
 0x173   : > { %v1083_v4 = vadd.f32 %v4632_v40, %v949_v48 }
 0x175   : > { %v1182_v38 = vpop.f32.mrf.mxu1 }
 0x17a   : > { %v1070_v16 = vpop.f32.mrf.mxu0 }
 0x17b   : > { %v4656_v17 = vadd.f32 %v1070_v16, %v954_v45 }
 0x182   : > { %v4661_v21 = vpop.f32.mrf.mxu0 }
 0x18a   : > { %v1075_v45 = vpop.f32.mrf.mxu0 }
 0x18b   : > { %v4672_v51 = vadd.f32 %v1075_v45, %v956_v59  ;;  %v827_v59 = vadd.f32 %v4548_v27, %v675_v19  ;;  %v1302_v19 = vpop.f32.mrf.mxu2 }
 0x18d   : > { %v947_v57 = vadd.f32 %v4550_v28, %v827_v59  ;;  %v4703_v28 = vld [vmem:[%s5125_s2] ss:$0 sm:$0xff]  ;;  %v3885_v59 = vld [vmem:[%s5127_s4 + $0x48] sm:$0xff] }
 0x18e   : > { %1835 = vmatpush.bf16.msra.mxu1 %v3885_v59  ;;  %4032 = vmatpush.bf16.msra.mxu3 %v3885_v59 }
 0x18f   : > { %v1081_v27 = vadd.f32 %v4626_v1, %v947_v57  ;;  %v3930_v1 = vld [vmem:[%s5127_s4 + $0x1b0] sm:$0xff]  ;;  %v1205_v57 = vadd.f32 %v1179_v12, %v1083_v4  ;;  %v685_v12 = vadd.f32 %v4591_v2, %v4589_v56  ;;  %v1206_v56 = vadd.f32 %v1182_v38, %v4637_v25 }
 0x190   : > { %2458 = vmatpush.bf16.msrb.mxu0 %v3930_v1 }
 0x191   : > { %v1203_v0 = vadd.f32 %v1174_v32, %v1081_v27  ;;  %v4717_v32 = vld [vmem:[%s5126_s3] ss:$0 sm:$0xff] }
 0x192   : > { %v1077_v7 = vpop.f32.mrf.mxu0  ;;  %1836 = vmatpush.bf16.msra.mxu1 %v3884_v23  ;;  %4033 = vmatpush.bf16.msra.mxu3 %v3884_v23  ;;  %v690_v23 = vadd.f32 %v4606_v26, %v4604_v24 }
 0x193   : > { %v4687_v41 = vadd.f32 %v1077_v7, %v957_v5  ;;  %v1323_v16 = vadd.f32 %v1294_v35, %v1203_v0  ;;  %v3929_v35 = vld [vmem:[%s5127_s4 + $0x1a8] sm:$0xff]  ;;  %v3927_v7 = vld [vmem:[%s5127_s4 + $0x198] sm:$0xff] }
 0x194   : > { %2459 = vmatpush.bf16.msrb.mxu0 %v3929_v35  ;;  %v3907_v0 = vld [vmem:[%s5127_s4 + $0xf8] sm:$0xff] }
 0x195   : > { %v1457_v36 = vadd.f32 %v1428_v39, %v1323_v16  ;;  %v3928_v39 = vld [vmem:[%s5127_s4 + $0x1a0] sm:$0xff]  ;;  %v3925_v16 = vld [vmem:[%s5127_s4 + $0x188] sm:$0xff] }
 0x196   : > { %2123 = vmatpush.bf16.msrb.mxu1 %v3907_v0 }
 0x198   : > { %2460 = vmatpush.bf16.msrb.mxu0 %v3928_v39 }
 0x19a   : > { %v1548_v60 = vpop.f32.mrf.mxu0  ;;  %2124 = vmatpush.bf16.msrb.mxu1 %v3906_v18 }
 0x19b   : > { %v1578_v9 = vadd.f32 %v1548_v60, %v1456_v44  ;;  %v1184_v44 = vpop.f32.mrf.mxu1  ;;  %v1325_v60 = vadd.f32 %v1299_v8, %v1205_v57  ;;  %v831_v8 = vadd.f32 %v4595_v13, %v685_v12 }
 0x19c   : > { %2461 = vmatpush.bf16.msrb.mxu0 %v3927_v7  ;;  %v3914_v7 = vld [vmem:[%s5127_s4 + $0x130] sm:$0xff] }
 0x19d   : > { %v1594_v31 = vmul.f32 %v4703_v28, %v1578_v9  ;;  %v1304_v9 = vpop.f32.mrf.mxu2  ;;  %v1459_v10 = vadd.f32 %v1433_v20, %v1325_v60  ;;  %v951_v13 = vadd.f32 %v4597_v14, %v831_v8  ;;  %v1326_v20 = vadd.f32 %v1302_v19, %v1206_v56  ;;  %v3915_v14 = vld [vmem:[%s5127_s4 + $0x138] sm:$0xff] }
 0x19e   : > { %2243 = vmatpush.bf16.msrb.mxu2 %v3915_v14 }
 0x19f   : > { %v1610_v53 = vadd.f32 %v4717_v32, %v1594_v31  ;;  %v1438_v31 = vpop.f32.mrf.mxu3  ;;  %v1085_v25 = vadd.f32 %v4639_v63, %v951_v13  ;;  %v1460_v19 = vadd.f32 %v1436_v49, %v1326_v20  ;;  %v3903_v49 = vld [vmem:[%s5127_s4 + $0xd8] sm:$0xff]  ;;  %v3900_v20 = vld [vmem:[%s5127_s4 + $0xc0] sm:$0xff] }
 0x1a0   : > { %2462 = vmatpush.bf16.msrb.mxu0 %v3926_v62 }
 0x1a1   : > { %v1622_v55 = vmul.f32 0.01, %v1610_v53  ;;  %v1207_v63 = vadd.f32 %v1184_v44, %v1085_v25  ;;  %v3902_v44 = vld [vmem:[%s5127_s4 + $0xd0] sm:$0xff] }
 0x1a2   : > { %v1550_v45 = vpop.f32.mrf.mxu0  ;;  %2244 = vmatpush.bf16.msrb.mxu2 %v3914_v7  ;;  %v3909_v7 = vld [vmem:[%s5127_s4 + $0x108] sm:$0xff] }
 0x1a3   : > { %v1579_v54 = vadd.f32 %v1550_v45, %v1457_v36  ;;  %v1634_v40 = vmax.f32 %v1610_v53, %v1622_v55  ;;  %v3924_v36 = vld [vmem:[%s5127_s4 + $0x180] sm:$0xff]  ;;  %v3905_v45 = vld [vmem:[%s5127_s4 + $0xe8] sm:$0xff]  ;;  %v1187_v50 = vpop.f32.mrf.mxu1 }
 0x1a4   : > { %2463 = vmatpush.bf16.msrb.mxu0 %v3925_v16  ;;  %2125 = vmatpush.bf16.msrb.mxu1 %v3905_v45  ;;  %v1208_v26 = vadd.f32 %v1187_v50, %v4646_v33  ;;  %v3901_v16 = vld [vmem:[%s5127_s4 + $0xc8] sm:$0xff] }
 0x1a5   : > { %v1595_v58 = vmul.f32 %v4703_v28, %v1579_v54  ;;  %v1307_v48 = vpop.f32.mrf.mxu2 }
 0x1a6   : > { %v1328_v12 = vadd.f32 %v1307_v48, %v1208_v26 }
 0x1a7   : > { %v1611_v5 = vadd.f32 %v4717_v32, %v1595_v58 }
 0x1a8   : > { %2464 = vmatpush.bf16.msrb.mxu0 %v3924_v36  ;;  %2126 = vmatpush.bf16.msrb.mxu1 %v3904_v61  ;;  %v3910_v61 = vld [vmem:[%s5127_s4 + $0x110] sm:$0xff] }
 0x1a9   : > { %v1623_v11 = vmul.f32 0.01, %v1611_v5 }
 0x1aa   : > { %v1553_v52 = vpop.f32.mrf.mxu0 }
 0x1ab   : > { %v1635_v27 = vmax.f32 %v1611_v5, %v1623_v11  ;;  %v1580_v15 = vadd.f32 %v1553_v52, %v1458_v3  ;;  %v1441_v5 = vpop.f32.mrf.mxu3  ;;  %v1327_v3 = vadd.f32 %v1304_v9, %v1207_v63  ;;  %v1189_v52 = vpop.f32.mrf.mxu1 }
 0x1ac   : > { %2127 = vmatpush.bf16.msrb.mxu1 %v3903_v49  ;;  %v1462_v13 = vadd.f32 %v1441_v5, %v1328_v12  ;;  %v3898_v49 = vld [vmem:[%s5127_s4 + $0xb0] sm:$0xff] }
 0x1ad   : > { %v3959_v22 = vpack.c.bf16 %v1635_v27, %v1634_v40  ;;  %v1596_v1 = vmul.f32 %v4703_v28, %v1580_v15  ;;  %v3913_v40 = vld [vmem:[%s5127_s4 + $0x128] sm:$0xff]  ;;  %v833_v27 = vadd.f32 %v4608_v29, %v690_v23  ;;  %v1461_v15 = vadd.f32 %v1438_v31, %v1327_v3  ;;  %v1309_v62 = vpop.f32.mrf.mxu2  ;;  %v3912_v29 = vld [vmem:[%s5127_s4 + $0x120] sm:$0xff] }
 0x1ae   : > { %2245 = vmatpush.bf16.msrb.mxu2 %v3913_v40  ;;  %v3908_v40 = vld [vmem:[%s5127_s4 + $0x100] sm:$0xff] }
 0x1af   : > { %3960 = vst [vmem:[#allocation3] sm:$0xff] %v3959_v22   ;;  %v1612_v2 = vadd.f32 %v4717_v32, %v1596_v1  ;;  %v953_v9 = vadd.f32 %v4610_v30, %v833_v27  ;;  %v4130_v27 = vmov 0  }
 0x1b0   : > { %2128 = vmatpush.bf16.msrb.mxu1 %v3902_v44  ;;  %1670 = vst [vmem:[#allocation3 + $0x30] sm:$0xf] %v4130_v27 }
 0x1b1   : > { %v1624_v38 = vmul.f32 0.01, %v1612_v2  ;;  %v1087_v18 = vadd.f32 %v4648_v6, %v953_v9 }
 0x1b2   : > { %v1555_v34 = vpop.f32.mrf.mxu0  ;;  %2246 = vmatpush.bf16.msrb.mxu2 %v3912_v29  ;;  %v3947_v29 = vld [vmem:[%s5127_s4 + $0x238] sm:$0xff] }
 0x1b3   : > { %v1581_v35 = vadd.f32 %v1555_v34, %v1459_v10  ;;  %v1636_v59 = vmax.f32 %v1612_v2, %v1624_v38  ;;  %v1443_v8 = vpop.f32.mrf.mxu3  ;;  %v3911_v2 = vld [vmem:[%s5127_s4 + $0x118] sm:$0xff]  ;;  %2685 = vmatpush.bf16.msra.mxu0 %v3947_v29 }
 0x1b4   : > { %2129 = vmatpush.bf16.msrb.mxu1 %v3901_v16 }
 0x1b5   : > { %v1597_v37 = vmul.f32 %v4703_v28, %v1581_v35 }
 0x1b6   : > { %v4770_v53 = vld [vmem:[#allocation3] sm:$0xff]  ;;  %2247 = vmatpush.bf16.msrb.mxu2 %v3911_v2 }
 0x1b7   : > { %v1613_v54 = vadd.f32 %v4717_v32, %v1597_v37  ;;  %1918 = vmatmul.bf16.vlgmr.msra.gmra.mxu2 %v4770_v53  ;;  %v1744_v24 = vshll.u32 %v4770_v53, 16  ;;  %v1742_v30 = vshrl.u32 %v4770_v53, 16  ;;  %v1956_v35 = vrot.slane %v4770_v53, 1  ;;  %v1192_v37 = vpop.f32.mrf.mxu1  ;;  %v3946_v2 = vld [vmem:[%s5127_s4 + $0x230] sm:$0xff] }
 0x1b8   : > { %2130 = vmatpush.bf16.msrb.mxu1 %v3900_v20  ;;  %2686 = vmatpush.bf16.msra.mxu0 %v3946_v2 }
 0x1b9   : > { %v1625_v39 = vmul.f32 0.01, %v1613_v54  ;;  %v1746_v33 = vrot.slane %v1744_v24, 1 }
 0x1ba   : > { %v1558_v58 = vpop.f32.mrf.mxu0  ;;  %2248 = vmatpush.bf16.msrb.mxu2 %v3910_v61  ;;  %v3893_v61 = vld [vmem:[%s5127_s4 + $0x88] sm:$0xff] }
 0x1bb   : > { %v1637_v4 = vmax.f32 %v1613_v54, %v1625_v39  ;;  %v1582_v55 = vadd.f32 %v1558_v58, %v1460_v19  ;;  %v1747_v50 = vor.u32 %v1746_v33, %v1742_v30  ;;  %v1209_v54 = vadd.f32 %v1189_v52, %v1087_v18  ;;  %v1312_v19 = vpop.f32.mrf.mxu2  ;;  %v1446_v5 = vpop.f32.mrf.mxu3 }
 0x1bd   : > { %v3964_v11 = vpack.c.bf16 %v1637_v4, %v1636_v59  ;;  %v1598_v57 = vmul.f32 %v4703_v28, %v1582_v55  ;;  %v1329_v58 = vadd.f32 %v1309_v62, %v1209_v54  ;;  %v3899_v59 = vld [vmem:[%s5127_s4 + $0xb8] sm:$0xff]  ;;  %v695_v4 = vadd.f32 %v4615_v43, %v4613_v42 }
 0x1be   : > { %2017 = vmatpush.bf16.msrb.mxu3 %v3899_v59  ;;  %2249 = vmatpush.bf16.msrb.mxu2 %v3909_v7  ;;  %v1210_v42 = vadd.f32 %v1192_v37, %v4656_v17  ;;  %v3897_v17 = vld [vmem:[%s5127_s4 + $0xa8] sm:$0xff] }
 0x1bf   : > { %4016 = vst [vmem:[#allocation3 + $0x8] sm:$0xff] %v3964_v11   ;;  %v1614_v22 = vadd.f32 %v4717_v32, %v1598_v57  ;;  %v835_v3 = vadd.f32 %v4617_v46, %v695_v4  ;;  %v1463_v11 = vadd.f32 %v1443_v8, %v1329_v58  ;;  %v1194_v52 = vpop.f32.mrf.mxu1 }
 0x1c1   : > { %v1626_v31 = vmul.f32 0.01, %v1614_v22  ;;  %v955_v46 = vadd.f32 %v4619_v47, %v835_v3 }
 0x1c2   : > { %v1560_v60 = vpop.f32.mrf.mxu0  ;;  %2018 = vmatpush.bf16.msrb.mxu3 %v3898_v49  ;;  %2250 = vmatpush.bf16.msrb.mxu2 %v3908_v40  ;;  %v3892_v49 = vld [vmem:[%s5127_s4 + $0x80] sm:$0xff] }
 0x1c3   : > { %v1583_v0 = vadd.f32 %v1560_v60, %v1461_v15  ;;  %v1638_v53 = vmax.f32 %v1614_v22, %v1626_v31  ;;  %v1330_v15 = vadd.f32 %v1312_v19, %v1210_v42  ;;  %v1314_v62 = vpop.f32.mrf.mxu2  ;;  %v1089_v24 = vadd.f32 %v4661_v21, %v955_v46  ;;  %v3896_v21 = vld [vmem:[%s5127_s4 + $0xa0] sm:$0xff] }
 0x1c5   : > { %v1599_v1 = vmul.f32 %v4703_v28, %v1583_v0  ;;  %v1464_v9 = vadd.f32 %v1446_v5, %v1330_v15  ;;  %v1211_v18 = vadd.f32 %v1194_v52, %v1089_v24 }
 0x1c6   : > { %v4808_v10 = vld [vmem:[#allocation3 + $0x8] sm:$0xff]  ;;  %2019 = vmatpush.bf16.msrb.mxu3 %v3897_v17  ;;  %4034 = vmatpush.bf16.msra.mxu2 %v3947_v29 }
 0x1c7   : > { %v1615_v34 = vadd.f32 %v4717_v32, %v1599_v1  ;;  %1923 = vmatmul.bf16.gmra.mxu2 %v4808_v10  ;;  %v1749_v56 = vshll.u32 %v4808_v10, 16  ;;  %v1957_v36 = vrot.slane %v4808_v10, 1  ;;  %v1753_v47 = vshrl.u32 %v4808_v10, 16  ;;  %v1448_v1 = vpop.f32.mrf.mxu3  ;;  %v1197_v20 = vpop.f32.mrf.mxu1 }
 0x1c9   : > { %v1627_v6 = vmul.f32 0.01, %v1615_v34  ;;  %v1751_v25 = vrot.slane %v1749_v56, 1  ;;  %v4826_v38 = vsel %vm719_vm1, %v1956_v35, %v1957_v36  ;;  %v1331_v35 = vadd.f32 %v1314_v62, %v1211_v18  ;;  %v3942_v62 = vld [vmem:[%s5127_s4 + $0x210] sm:$0xff] }
 0x1ca   : > { %v1563_v45 = vpop.f32.mrf.mxu0  ;;  %2020 = vmatpush.bf16.msrb.mxu3 %v3896_v21  ;;  %4035 = vmatpush.bf16.msra.mxu2 %v3946_v2  ;;  %v3922_v21 = vld [vmem:[%s5127_s4 + $0x170] sm:$0xff] }
 0x1cb   : > { %v1639_v48 = vmax.f32 %v1615_v34, %v1627_v6  ;;  %v1584_v14 = vadd.f32 %v1563_v45, %v1462_v13  ;;  %v1752_v39 = vsel %vm463_vm0, %v1747_v50, %v1751_v25  ;;  %v1755_v8 = vor.u32 %v1753_v47, %v1751_v25  ;;  %v3895_v6 = vld [vmem:[%s5127_s4 + $0x98] sm:$0xff]  ;;  %v3945_v45 = vld [vmem:[%s5127_s4 + $0x228] sm:$0xff]  ;;  %v3894_v50 = vld [vmem:[%s5127_s4 + $0x90] sm:$0xff]  ;;  %v1317_v25 = vpop.f32.mrf.mxu2 }
 0x1cc   : > { %1837 = vmatmul.bf16.vlgmr.msra.gmra.mxu1 %v1752_v39  ;;  %v1465_v54 = vadd.f32 %v1448_v1, %v1331_v35  ;;  %2687 = vmatpush.bf16.msra.mxu0 %v3945_v45 }
 0x1cd   : > { %v3969_v63 = vpack.c.bf16 %v1639_v48, %v1638_v53  ;;  %v1600_v55 = vmul.f32 %v4703_v28, %v1584_v14  ;;  %v3944_v48 = vld [vmem:[%s5127_s4 + $0x220] sm:$0xff]  ;;  %v1212_v14 = vadd.f32 %v1197_v20, %v4672_v51 }
 0x1ce   : > { %2021 = vmatpush.bf16.msrb.mxu3 %v3895_v6  ;;  %4036 = vmatpush.bf16.msra.mxu2 %v3945_v45 }
 0x1cf   : > { %4017 = vst [vmem:[#allocation3 + $0x10] sm:$0xff] %v3969_v63   ;;  %v1616_v43 = vadd.f32 %v4717_v32, %v1600_v55  ;;  %v1451_v58 = vpop.f32.mrf.mxu3  ;;  %v1332_v63 = vadd.f32 %v1317_v25, %v1212_v14  ;;  %v1199_v51 = vpop.f32.mrf.mxu1  ;;  %v3921_v14 = vld [vmem:[%s5127_s4 + $0x168] sm:$0xff] }
 0x1d0   : > { %2688 = vmatpush.bf16.msra.mxu0 %v3944_v48  ;;  %v1213_v27 = vadd.f32 %v1199_v51, %v4687_v41  ;;  %v3939_v41 = vld [vmem:[%s5127_s4 + $0x1f8] sm:$0xff] }
 0x1d1   : > { %v1628_v26 = vmul.f32 0.01, %v1616_v43  ;;  %2577 = vmatpush.bf16.msra.mxu1 %v3939_v41 }
 0x1d2   : > { %v1565_v23 = vpop.f32.mrf.mxu0  ;;  %2022 = vmatpush.bf16.msrb.mxu3 %v3894_v50  ;;  %4037 = vmatpush.bf16.msra.mxu2 %v3944_v48  ;;  %v3935_v48 = vld [vmem:[%s5127_s4 + $0x1d8] sm:$0xff] }
 0x1d3   : > { %v1585_v57 = vadd.f32 %v1565_v23, %v1463_v11  ;;  %v1640_v31 = vmax.f32 %v1616_v43, %v1628_v26  ;;  %v3943_v11 = vld [vmem:[%s5127_s4 + $0x218] sm:$0xff]  ;;  %v1466_v23 = vadd.f32 %v1451_v58, %v1332_v63  ;;  %v1319_v43 = vpop.f32.mrf.mxu2 }
 0x1d4   : > { %2689 = vmatpush.bf16.msra.mxu0 %v3943_v11  ;;  %v1333_v24 = vadd.f32 %v1319_v43, %v1213_v27  ;;  %v3919_v27 = vld [vmem:[%s5127_s4 + $0x158] sm:$0xff] }
 0x1d5   : > { %v1601_v44 = vmul.f32 %v4703_v28, %v1585_v57 }
 0x1d6   : > { %v4855_v60 = vld [vmem:[#allocation3 + $0x10] sm:$0xff]  ;;  %2023 = vmatpush.bf16.msrb.mxu3 %v3893_v61  ;;  %4038 = vmatpush.bf16.msra.mxu2 %v3943_v11  ;;  %v3933_v11 = vld [vmem:[%s5127_s4 + $0x1c8] sm:$0xff] }
 0x1d7   : > { %v1617_v22 = vadd.f32 %v4717_v32, %v1601_v44  ;;  %1928 = vmatmul.bf16.gmra.mxu2 %v4855_v60  ;;  %2465 = vmatmul.bf16.vlgmr.msrb.gmra.mxu0 %v4855_v60  ;;  %v1757_v0 = vshll.u32 %v4855_v60, 16  ;;  %v1761_v7 = vshrl.u32 %v4855_v60, 16  ;;  %v1453_v47 = vpop.f32.mrf.mxu3  ;;  %v3920_v61 = vld [vmem:[%s5127_s4 + $0x160] sm:$0xff] }
 0x1d8   : > { %2690 = vmatpush.bf16.msra.mxu0 %v3942_v62  ;;  %v1467_v1 = vadd.f32 %v1453_v47, %v1333_v24  ;;  %v1684_v47 = vld [vmem:[#allocation3 + $0x30] sm:$0xf] }
 0x1d9   : > { %v1629_v12 = vmul.f32 0.01, %v1617_v22  ;;  %v1759_v33 = vrot.slane %v1757_v0, 1  ;;  %v3941_v0 = vld [vmem:[%s5127_s4 + $0x208] sm:$0xff] }
 0x1da   : > { %v1568_v16 = vpop.f32.mrf.mxu0  ;;  %2024 = vmatpush.bf16.msrb.mxu3 %v3892_v49  ;;  %4039 = vmatpush.bf16.msra.mxu2 %v3942_v62 }
 0x1db   : > { %v1641_v34 = vmax.f32 %v1617_v22, %v1629_v12  ;;  %v1586_v30 = vadd.f32 %v1568_v16, %v1464_v9  ;;  %v4870_v56 = vsel %vm463_vm0, %v1755_v8, %v1759_v33  ;;  %v1763_v57 = vor.u32 %v1761_v7, %v1759_v33  ;;  %v3923_v22 = vld [vmem:[%s5127_s4 + $0x178] sm:$0xff]  ;;  %v3938_v12 = vld [vmem:[%s5127_s4 + $0x1f0] sm:$0xff]  ;;  %v3940_v33 = vld [vmem:[%s5127_s4 + $0x200] sm:$0xff] }
 0x1dc   : > { %1842 = vmatmul.bf16.gmra.mxu1 %v4870_v56  ;;  %2691 = vmatpush.bf16.msra.mxu0 %v3941_v0 }
 0x1dd   : > { %v3974_v13 = vpack.c.bf16 %v1641_v34, %v1640_v31  ;;  %v1602_v37 = vmul.f32 %v4703_v28, %v1586_v30  ;;  %2578 = vmatpush.bf16.msra.mxu1 %v3938_v12  ;;  %v3937_v34 = vld [vmem:[%s5127_s4 + $0x1e8] sm:$0xff] }
 0x1de   : > { %4040 = vmatpush.bf16.msra.mxu2 %v3941_v0 }
 0x1df   : > { %4018 = vst [vmem:[#allocation3 + $0x18] sm:$0xff] %v3974_v13   ;;  %v1618_v19 = vadd.f32 %v4717_v32, %v1602_v37  ;;  %v3936_v37 = vld [vmem:[%s5127_s4 + $0x1e0] sm:$0xff] }
 0x1e0   : > { %2692 = vmatpush.bf16.msra.mxu0 %v3940_v33 }
 0x1e1   : > { %v1630_v55 = vmul.f32 0.01, %v1618_v19  ;;  %2579 = vmatpush.bf16.msra.mxu1 %v3937_v34 }
 0x1e2   : > { %v1570_v53 = vpop.f32.mrf.mxu0  ;;  %4041 = vmatpush.bf16.msra.mxu2 %v3940_v33 }
 0x1e3   : > { %v1587_v39 = vadd.f32 %v1570_v53, %v1465_v54  ;;  %v1642_v46 = vmax.f32 %v1618_v19, %v1630_v55 }
 0x1e5   : > { %v1603_v59 = vmul.f32 %v4703_v28, %v1587_v39  ;;  %2580 = vmatpush.bf16.msra.mxu1 %v3936_v37  ;;  %v3934_v39 = vld [vmem:[%s5127_s4 + $0x1d0] sm:$0xff] }
 0x1e6   : > { %v4895_v4 = vld [vmem:[#allocation3 + $0x18] sm:$0xff] }
 0x1e7   : > { %v1619_v5 = vadd.f32 %v4717_v32, %v1603_v59  ;;  %1933 = vmatmul.bf16.gmra.mxu2 %v4895_v4  ;;  %2470 = vmatmul.bf16.gmra.mxu0 %v4895_v4  ;;  %v1765_v3 = vshll.u32 %v4895_v4, 16  ;;  %v1769_v6 = vshrl.u32 %v4895_v4, 16 }
 0x1e9   : > { %v1631_v42 = vmul.f32 0.01, %v1619_v5  ;;  %v1767_v40 = vrot.slane %v1765_v3, 1  ;;  %2581 = vmatpush.bf16.msra.mxu1 %v3935_v48 }
 0x1ea   : > { %v1573_v52 = vpop.f32.mrf.mxu0 }
 0x1eb   : > { %v1643_v15 = vmax.f32 %v1619_v5, %v1631_v42  ;;  %v1588_v44 = vadd.f32 %v1573_v52, %v1466_v23  ;;  %v4910_v17 = vsel %vm463_vm0, %v1763_v57, %v1767_v40  ;;  %v1771_v50 = vor.u32 %v1769_v6, %v1767_v40  ;;  %v3932_v40 = vld [vmem:[%s5127_s4 + $0x1c0] sm:$0xff] }
 0x1ec   : > { %1847 = vmatmul.bf16.vlgmr.msra.gmra.mxu3 %v4910_v17  ;;  %2131 = vmatmul.bf16.vlgmr.msrb.gmra.mxu1 %v4808_v10 }
 0x1ed   : > { %v4915_v26 = vpack.c.bf16 %v1643_v15, %v1642_v46  ;;  %v1604_v29 = vmul.f32 %v4703_v28, %v1588_v44  ;;  %2351 = vmatpush.bf16.msra.mxu3 %v3923_v22  ;;  %2582 = vmatpush.bf16.msra.mxu1 %v3934_v39  ;;  %v3918_v46 = vld [vmem:[%s5127_s4 + $0x150] sm:$0xff]  ;;  %v1961_v15 = vrot.slane %v4895_v4, 1  ;;  %v1959_v44 = vrot.slane %v4855_v60, 1 }
 0x1ef   : > { %v3988_v9 = vunpack.c.l.b16 %v4915_v26  ;;  %v1620_v18 = vadd.f32 %v4717_v32, %v1604_v29  ;;  %v2185_v19 = vshrl.u32 %v4915_v26, 16  ;;  %v2297_v63 = vrot.slane %v4915_v26, 1 }
 0x1f0   : > { %v1962_v24 = vsel %vm719_vm1, %v1959_v44, %v1961_v15 }
 0x1f1   : > { %v4936_v16 = vpack.c.b16 %v3988_v9, %v3988_v9  ;;  %2352 = vmatpush.bf16.msra.mxu3 %v3922_v21  ;;  %v1632_v35 = vmul.f32 0.01, %v1620_v18  ;;  %2583 = vmatpush.bf16.msra.mxu1 %v3933_v11  ;;  %v2298_v10 = vsel %vm719_vm1, %v1961_v15, %v2297_v63  ;;  %v2512_v9 = vunpack.c.l.b16 %v1684_v47 }
 0x1f2   : > { %v1575_v8 = vpop.f32.mrf.mxu0 }
 0x1f3   : > { %v1589_v31 = vadd.f32 %v1575_v8, %v1467_v1  ;;  %v1773_v30 = vshll.u32 %v4936_v16, 16  ;;  %v1644_v25 = vmax.f32 %v1620_v18, %v1632_v35 }
 0x1f5   : > { %v1605_v2 = vmul.f32 %v4703_v28, %v1589_v31  ;;  %v1775_v20 = vrot.slane %v1773_v30, 1  ;;  %v2181_v28 = vshll.u32 %v4915_v26, 16  ;;  %2353 = vmatpush.bf16.msra.mxu3 %v3921_v14  ;;  %2584 = vmatpush.bf16.msra.mxu1 %v3932_v40 }
 0x1f7   : > { %v1621_v13 = vadd.f32 %v4717_v32, %v1605_v2  ;;  %2251 = vmatmul.bf16.vlgmr.msrb.gmra.mxu2 %v4870_v56  ;;  %2475 = vmatmul.bf16.gmra.mxu0 %v4915_v26  ;;  %v1776_v32 = vsel %vm463_vm0, %v1771_v50, %v1775_v20  ;;  %v2183_v56 = vrot.slane %v2181_v28, 1 }
 0x1f9   : > { %v1633_v45 = vmul.f32 0.01, %v1621_v13  ;;  %v2187_v51 = vor.u32 %v2185_v19, %v2183_v56  ;;  %2354 = vmatpush.bf16.msra.mxu3 %v3920_v61  ;;  %v2184_v62 = vsel %vm463_vm0, %v1771_v50, %v2183_v56 }
 0x1fb   : > { %v1645_v54 = vmax.f32 %v1621_v13, %v1633_v45 }
 0x1fc   : > { %2136 = vmatmul.bf16.gmra.mxu1 %v4855_v60  ;;  %1852 = vmatmul.bf16.gmra.mxu3 %v1776_v32  ;;  %v3916_v60 = vld [vmem:[%s5127_s4 + $0x140] sm:$0xff] }
 0x1fd   : > { %v4956_v53 = vpack.c.bf16 %v1645_v54, %v1644_v25  ;;  %2355 = vmatpush.bf16.msra.mxu3 %v3919_v27 }
 0x1ff   : > { %v3992_v58 = vunpack.c.l.b16 %v4956_v53  ;;  %v2631_v59 = vrot.slane %v4956_v53, 1  ;;  %v2515_v55 = vshll.u32 %v4956_v53, 16  ;;  %v2519_v33 = vshrl.u32 %v4956_v53, 16 }
 0x201   : > { %v2179_v5 = vpack.c.b16 %v3992_v58, %v3992_v58  ;;  %v2632_v7 = vsel %vm719_vm1, %v2297_v63, %v2631_v59  ;;  %v2517_v3 = vrot.slane %v2515_v55, 1  ;;  %2356 = vmatpush.bf16.msra.mxu3 %v3918_v46 }
 0x203   : > { %v2189_v49 = vshll.u32 %v2179_v5, 16  ;;  %v2518_v23 = vsel %vm463_vm0, %v2187_v51, %v2517_v3  ;;  %v2299_v42 = vrot.slane %v2179_v5, 1  ;;  %v2521_v31 = vor.u32 %v2519_v33, %v2517_v3 }
 0x205   : > { %v2191_v43 = vrot.slane %v2189_v49, 1  ;;  %v4984_v57 = vsel %vm719_vm1, %v2297_v63, %v2299_v42 }
 0x207   : > { %v2192_v52 = vsel %vm463_vm0, %v2187_v51, %v2191_v43  ;;  %2256 = vmatmul.bf16.gmra.mxu2 %v4910_v17  ;;  %2480 = vmatmul.bf16.gmra.mxu0 %v4956_v53 }
 0x20c   : > { %2141 = vmatmul.bf16.gmra.mxu1 %v4895_v4  ;;  %2025 = vmatmul.bf16.vlgmr.msrb.gmra.mxu3 %v4826_v38  ;;  %v1960_v38 = vsel %vm719_vm1, %v1957_v36, %v1959_v44  ;;  %v3917_v4 = vld [vmem:[%s5127_s4 + $0x148] sm:$0xff]  ;;  %v1963_v36 = vrot.slane %v4936_v16, 1 }
 0x20d   : > { %2357 = vmatpush.bf16.msra.mxu3 %v3917_v4 }
 0x20e   : > { %v1964_v41 = vsel %vm719_vm1, %v1961_v15, %v1963_v36 }
 0x211   : > { %2358 = vmatpush.bf16.msra.mxu3 %v3916_v60 }
 0x217   : > { %2261 = vmatmul.bf16.gmra.mxu2 %v2184_v62  ;;  %2693 = vmatmul.bf16.vlgmr.msra.gmra.mxu0 %v1962_v24 }
 0x21c   : > { %2146 = vmatmul.bf16.gmra.mxu1 %v4915_v26  ;;  %2030 = vmatmul.bf16.gmra.mxu3 %v1960_v38 }
 0x227   : > { %2266 = vmatmul.bf16.gmra.mxu2 %v2192_v52 }
 0x22c   : > { %2585 = vmatmul.bf16.vlgmr.msra.gmra.mxu1 %v4910_v17  ;;  %2035 = vmatmul.bf16.gmra.mxu3 %v1962_v24  ;;  %v2513_v17 = vpack.c.b16 %v2512_v9, %v2512_v9 }
 0x22e   : > { %v2633_v8 = vrot.slane %v2513_v17, 1  ;;  %v2523_v16 = vshll.u32 %v2513_v17, 16 }
 0x230   : > { %v2634_v18 = vsel %vm719_vm1, %v2631_v59, %v2633_v8  ;;  %v2525_v34 = vrot.slane %v2523_v16, 1 }
 0x232   : > { %v2526_v13 = vsel %vm463_vm0, %v2521_v31, %v2525_v34 }
 0x237   : > { %2698 = vmatmul.bf16.vlgmr.msra.gmra.mxu2 %v2298_v10 }
 0x23a   : > { %v1919_v26 = vpop.f32.mrf.mxu2 }
 0x23c   : > { %2590 = vmatmul.bf16.gmra.mxu1 %v2184_v62  ;;  %2040 = vmatmul.bf16.gmra.mxu3 %v1964_v41 }
 0x242   : > { %v1921_v22 = vpop.f32.mrf.mxu2 }
 0x247   : > { %2703 = vmatmul.bf16.gmra.mxu2 %v2632_v7 }
 0x249   : > { %v1838_v0 = vpop.f32.mrf.mxu1 }
 0x24a   : > { %v1920_v29 = vadd.f32 %v1919_v26, %v1838_v0  ;;  %v1924_v12 = vpop.f32.mrf.mxu2 }
 0x24c   : > { %2595 = vmatmul.bf16.gmra.mxu1 %v2518_v23  ;;  %2359 = vmatmul.bf16.vlgmr.msra.gmra.mxu3 %v1960_v38 }
 0x251   : > { %v1840_v21 = vpop.f32.mrf.mxu1 }
 0x252   : > { %v5018_v1 = vadd.f32 %v1921_v22, %v1840_v21  ;;  %v1926_v30 = vpop.f32.mrf.mxu2 }
 0x254   : > { %v2466_v39 = vpop.f32.mrf.mxu0 }
 0x257   : > { %2708 = vmatmul.bf16.gmra.mxu2 %v2634_v18 }
 0x259   : > { %v1843_v2 = vpop.f32.mrf.mxu1 }
 0x25a   : > { %v1925_v35 = vadd.f32 %v1924_v12, %v1843_v2  ;;  %v1929_v37 = vpop.f32.mrf.mxu2 }
 0x25c   : > { %2600 = vmatmul.bf16.gmra.mxu1 %v2526_v13  ;;  %2364 = vmatmul.bf16.gmra.mxu3 %v1962_v24  ;;  %v2468_v55 = vpop.f32.mrf.mxu0 }
 0x261   : > { %v1845_v6 = vpop.f32.mrf.mxu1 }
 0x262   : > { %v5025_v20 = vadd.f32 %v1926_v30, %v1845_v6  ;;  %v1931_v45 = vpop.f32.mrf.mxu2 }
 0x264   : > { %v2471_v49 = vpop.f32.mrf.mxu0 }
 0x269   : > { %v2132_v25 = vpop.f32.mrf.mxu1 }
 0x26a   : > { %v1934_v54 = vpop.f32.mrf.mxu2 }
 0x26c   : > { %2369 = vmatmul.bf16.gmra.mxu3 %v2298_v10  ;;  %v5032_v40 = vpop.f32.mrf.mxu0 }
 0x26f   : > { %v1848_v28 = vpop.f32.mrf.mxu3 }
 0x270   : > { %v1930_v50 = vadd.f32 %v1929_v37, %v1848_v28 }
 0x271   : > { %v2134_v56 = vpop.f32.mrf.mxu1 }
 0x272   : > { %v1936_v19 = vpop.f32.mrf.mxu2 }
 0x274   : > { %v5036_v62 = vpop.f32.mrf.mxu0 }
 0x277   : > { %v1850_v32 = vpop.f32.mrf.mxu3 }
 0x278   : > { %v5027_v53 = vadd.f32 %v1931_v45, %v1850_v32  ;;  %v5064_v45 = vld [vmem:[%s5128_s5] ss:$0 sm:$0xff] }
 0x279   : > { %v2137_v63 = vpop.f32.mrf.mxu1  ;;  %v5070_v32 = vld [vmem:[%s5129_s6] ss:$0 sm:$0xff] }
 0x27a   : > { %v2252_v59 = vpop.f32.mrf.mxu2 }
 0x27c   : > { %2374 = vmatmul.bf16.gmra.mxu3 %v4984_v57  ;;  %v5042_v36 = vpop.f32.mrf.mxu0 }
 0x27f   : > { %v1853_v48 = vpop.f32.mrf.mxu3 }
 0x280   : > { %v1935_v14 = vadd.f32 %v1934_v54, %v1853_v48 }
 0x281   : > { %v2139_v3 = vpop.f32.mrf.mxu1 }
 0x282   : > { %v2254_v11 = vpop.f32.mrf.mxu2 }
 0x284   : > { %v5048_v47 = vpop.f32.mrf.mxu0 }
 0x287   : > { %v1855_v61 = vpop.f32.mrf.mxu3 }
 0x288   : > { %v5030_v58 = vadd.f32 %v1936_v19, %v1855_v61 }
 0x289   : > { %v2142_v42 = vpop.f32.mrf.mxu1 }
 0x28a   : > { %v2257_v43 = vpop.f32.mrf.mxu2 }
 0x28c   : > { %v5056_v8 = vpop.f32.mrf.mxu0 }
 0x28f   : > { %v2026_v5 = vpop.f32.mrf.mxu3 }
 0x290   : > { %v2046_v51 = vadd.f32 %v2026_v5, %v1920_v29 }
 0x291   : > { %v5034_v46 = vpop.f32.mrf.mxu1 }
 0x292   : > { %v2152_v7 = vadd.f32 %v2132_v25, %v2046_v51  ;;  %v2259_v44 = vpop.f32.mrf.mxu2 }
 0x294   : > { %v2272_v33 = vadd.f32 %v2252_v59, %v2152_v7  ;;  %v2694_v13 = vpop.f32.mrf.mxu0 }
 0x297   : > { %v2028_v23 = vpop.f32.mrf.mxu3 }
 0x298   : > { %v2047_v16 = vadd.f32 %v2028_v23, %v5018_v1 }
 0x299   : > { %v2147_v4 = vpop.f32.mrf.mxu1 }
 0x29a   : > { %v5040_v10 = vpop.f32.mrf.mxu2  ;;  %v2153_v2 = vadd.f32 %v2134_v56, %v2047_v16 }
 0x29c   : > { %v2273_v28 = vadd.f32 %v2254_v11, %v2153_v2  ;;  %v2696_v19 = vpop.f32.mrf.mxu0 }
 0x29f   : > { %v2031_v57 = vpop.f32.mrf.mxu3 }
 0x2a0   : > { %v2048_v52 = vadd.f32 %v2031_v57, %v1925_v35 }
 0x2a1   : > { %v5044_v41 = vpop.f32.mrf.mxu1 }
 0x2a2   : > { %v2154_v27 = vadd.f32 %v2137_v63, %v2048_v52  ;;  %v5046_v22 = vpop.f32.mrf.mxu2 }
 0x2a4   : > { %v2274_v59 = vadd.f32 %v2257_v43, %v2154_v27 }
 0x2a7   : > { %v2033_v15 = vpop.f32.mrf.mxu3 }
 0x2a9   : > { %v2586_v17 = vpop.f32.mrf.mxu1 }
 0x2aa   : > { %v5052_v12 = vpop.f32.mrf.mxu2 }
 0x2af   : > { %v2036_v24 = vpop.f32.mrf.mxu3 }
 0x2b0   : > { %v2050_v38 = vadd.f32 %v2036_v24, %v1930_v50 }
 0x2b1   : > { %v2588_v18 = vpop.f32.mrf.mxu1 }
 0x2b2   : > { %v5038_v60 = vadd.f32 %v2142_v42, %v2050_v38  ;;  %v5059_v30 = vpop.f32.mrf.mxu2 }
 0x2b7   : > { %v2038_v26 = vpop.f32.mrf.mxu3 }
 0x2b9   : > { %v2591_v1 = vpop.f32.mrf.mxu1 }
 0x2ba   : > { %v2699_v48 = vpop.f32.mrf.mxu2 }
 0x2bf   : > { %v2041_v0 = vpop.f32.mrf.mxu3 }
 0x2c0   : > { %v2052_v29 = vadd.f32 %v2041_v0, %v1935_v14 }
 0x2c2   : > { %v5050_v9 = vadd.f32 %v2147_v4, %v2052_v29  ;;  %v2701_v38 = vpop.f32.mrf.mxu2 }
 0x2c7   : > { %v5054_v21 = vpop.f32.mrf.mxu3 }
 0x2ca   : > { %v2704_v2 = vpop.f32.mrf.mxu2 }
 0x2cf   : > { %v2360_v31 = vpop.f32.mrf.mxu3 }
 0x2d0   : > { %v2380_v34 = vadd.f32 %v2360_v31, %v2272_v33 }
 0x2d2   : > { %v2486_v35 = vadd.f32 %v2466_v39, %v2380_v34  ;;  %v2049_v39 = vadd.f32 %v2033_v15, %v5025_v20  ;;  %v2276_v34 = vadd.f32 %v5040_v10, %v5038_v60 }
 0x2d4   : > { %v2606_v6 = vadd.f32 %v2586_v17, %v2486_v35  ;;  %v2155_v11 = vadd.f32 %v2139_v3, %v2049_v39 }
 0x2d6   : > { %v2714_v37 = vadd.f32 %v2694_v13, %v2606_v6  ;;  %v2275_v0 = vadd.f32 %v2259_v44, %v2155_v11 }
 0x2d7   : > { %v2362_v50 = vpop.f32.mrf.mxu3 }
 0x2d8   : > { %v2381_v25 = vadd.f32 %v2362_v50, %v2273_v28  ;;  %v2726_v54 = vmul.f32 %v5064_v45, %v2714_v37 }
 0x2da   : > { %v2487_v56 = vadd.f32 %v2468_v55, %v2381_v25  ;;  %v2738_v61 = vadd.f32 %v5070_v32, %v2726_v54  ;;  %v2593_v55 = vpop.f32.mrf.mxu1 }
 0x2dc   : > { %v2607_v14 = vadd.f32 %v2588_v18, %v2487_v56  ;;  %v2746_v23 = vmul.f32 0.01, %v2738_v61 }
 0x2de   : > { %v2715_v63 = vadd.f32 %v2696_v19, %v2607_v14  ;;  %v2754_v4 = vmax.f32 %v2738_v61, %v2746_v23  ;;  %v2706_v14 = vpop.f32.mrf.mxu2 }
 0x2df   : > { %v2365_v5 = vpop.f32.mrf.mxu3 }
 0x2e0   : > { %v2727_v51 = vmul.f32 %v5064_v45, %v2715_v63  ;;  %v2382_v7 = vadd.f32 %v2365_v5, %v2274_v59 }
 0x2e2   : > { %v2739_v42 = vadd.f32 %v5070_v32, %v2727_v51  ;;  %v2488_v57 = vadd.f32 %v2471_v49, %v2382_v7  ;;  %v2596_v33 = vpop.f32.mrf.mxu1  ;;  %v2051_v49 = vadd.f32 %v2038_v26, %v5027_v53 }
 0x2e4   : > { %v2747_v52 = vmul.f32 0.01, %v2739_v42  ;;  %v2608_v24 = vadd.f32 %v2591_v1, %v2488_v57  ;;  %v2157_v6 = vadd.f32 %v5034_v46, %v2051_v49 }
 0x2e6   : > { %v2755_v20 = vmax.f32 %v2739_v42, %v2747_v52  ;;  %v2716_v15 = vadd.f32 %v2699_v48, %v2608_v24  ;;  %v2277_v60 = vadd.f32 %v5046_v22, %v2157_v6  ;;  %v2278_v22 = vadd.f32 %v5052_v12, %v5050_v9 }
 0x2e7   : > { %v2367_v29 = vpop.f32.mrf.mxu3 }
 0x2e8   : > { %v3997_v43 = vpack.c.bf16 %v2755_v20, %v2754_v4  ;;  %v2383_v27 = vadd.f32 %v2367_v29, %v2275_v0  ;;  %v2728_v17 = vmul.f32 %v5064_v45, %v2716_v15 }
 0x2ea   : > { %3998 = vst [vmem:[%s4214_s20] sm:$0xff] %v3997_v43   ;;  %v2489_v3 = vadd.f32 %v5032_v40, %v2383_v27  ;;  %v2740_v18 = vadd.f32 %v5070_v32, %v2728_v17  ;;  %v2598_v10 = vpop.f32.mrf.mxu1 }
 0x2ec   : > { %v2609_v16 = vadd.f32 %v2593_v55, %v2489_v3  ;;  %v2748_v37 = vmul.f32 0.01, %v2740_v18 }
 0x2ee   : > { %v2717_v31 = vadd.f32 %v2701_v38, %v2609_v16  ;;  %v2756_v50 = vmax.f32 %v2740_v18, %v2748_v37 }
 0x2ef   : > { %v2370_v44 = vpop.f32.mrf.mxu3 }
 0x2f0   : > { %v2729_v35 = vmul.f32 %v5064_v45, %v2717_v31  ;;  %v2384_v13 = vadd.f32 %v2370_v44, %v2276_v34 }
 0x2f2   : > { %v2741_v40 = vadd.f32 %v5070_v32, %v2729_v35  ;;  %v2490_v28 = vadd.f32 %v5036_v62, %v2384_v13  ;;  %v2053_v62 = vadd.f32 %v5054_v21, %v5030_v58  ;;  %v2601_v7 = vpop.f32.mrf.mxu1  ;;  %v2709_v58 = vpop.f32.mrf.mxu2 }
 0x2f4   : > { %v2749_v53 = vmul.f32 0.01, %v2741_v40  ;;  %v2610_v26 = vadd.f32 %v2596_v33, %v2490_v28  ;;  %v2159_v11 = vadd.f32 %v5044_v41, %v2053_v62 }
 0x2f6   : > { %v2757_v25 = vmax.f32 %v2741_v40, %v2749_v53  ;;  %v2718_v1 = vadd.f32 %v2704_v2, %v2610_v26  ;;  %v2279_v9 = vadd.f32 %v5059_v30, %v2159_v11 }
 0x2f7   : > { %v2372_v54 = vpop.f32.mrf.mxu3 }
 0x2f8   : > { %v4002_v56 = vpack.c.bf16 %v2757_v25, %v2756_v50  ;;  %v2385_v48 = vadd.f32 %v2372_v54, %v2277_v60  ;;  %v2730_v46 = vmul.f32 %v5064_v45, %v2718_v1 }
 0x2fa   : > { %4023 = vst [vmem:[%s4214_s20 + $0x8] sm:$0xff] %v4002_v56   ;;  %v2491_v19 = vadd.f32 %v5042_v36, %v2385_v48  ;;  %v2742_v61 = vadd.f32 %v5070_v32, %v2730_v46  ;;  %v2603_v15 = vpop.f32.mrf.mxu1 }
 0x2fc   : > { %v2611_v39 = vadd.f32 %v2598_v10, %v2491_v19  ;;  %v2750_v23 = vmul.f32 0.01, %v2742_v61 }
 0x2fe   : > { %v2719_v63 = vadd.f32 %v2706_v14, %v2611_v39  ;;  %v2758_v55 = vmax.f32 %v2742_v61, %v2750_v23 }
 0x2ff   : > { %v2375_v59 = vpop.f32.mrf.mxu3 }
 0x300   : > { %v2731_v5 = vmul.f32 %v5064_v45, %v2719_v63  ;;  %v2386_v51 = vadd.f32 %v2375_v59, %v2278_v22 }
 0x302   : > { %v2743_v36 = vadd.f32 %v5070_v32, %v2731_v5  ;;  %v2492_v42 = vadd.f32 %v5048_v47, %v2386_v51  ;;  %v2711_v47 = vpop.f32.mrf.mxu2 }
 0x304   : > { %v2751_v21 = vmul.f32 0.01, %v2743_v36  ;;  %v2612_v57 = vadd.f32 %v2601_v7, %v2492_v42 }
 0x306   : > { %v2759_v52 = vmax.f32 %v2743_v36, %v2751_v21  ;;  %v2720_v24 = vadd.f32 %v2709_v58, %v2612_v57 }
 0x307   : > { %v2377_v12 = vpop.f32.mrf.mxu3 }
 0x308   : > { %v4007_v38 = vpack.c.bf16 %v2759_v52, %v2758_v55  ;;  %v2387_v4 = vadd.f32 %v2377_v12, %v2279_v9  ;;  %v2732_v41 = vmul.f32 %v5064_v45, %v2720_v24 }
 0x30a   : > { %4024 = vst [vmem:[%s4214_s20 + $0x10] sm:$0xff] %v4007_v38   ;;  %v2493_v20 = vadd.f32 %v5056_v8, %v2387_v4  ;;  %v2744_v29 = vadd.f32 %v5070_v32, %v2732_v41 }
 0x30c   : > { %v2613_v0 = vadd.f32 %v2603_v15, %v2493_v20  ;;  %v2752_v17 = vmul.f32 0.01, %v2744_v29 }
 0x30e   : > { %v2721_v43 = vadd.f32 %v2711_v47, %v2613_v0  ;;  %v2760_v16 = vmax.f32 %v2744_v29, %v2752_v17 }
 0x310   : > { %v2733_v27 = vmul.f32 %v5064_v45, %v2721_v43 }
 0x312   : > { %v2745_v30 = vadd.f32 %v5070_v32, %v2733_v27 }
 0x314   : > { %v2753_v3 = vmul.f32 0.01, %v2745_v30 }
 0x316   : > { %v2761_v33 = vmax.f32 %v2745_v30, %v2753_v3 }
 0x318   : > { %v4012_v49 = vpack.c.bf16 %v2761_v33, %v2760_v16 }
 0x31a   : > { %4025 = vst [vmem:[%s4214_s20 + $0x18] sm:$0xff] %v4012_v49  }
 0x31b PF: > { %s17_s28 = sadd.s32 1, %s4128_s28   ;;  %s5131_s24 = smov %s4120_s26 }
 0x31c   : > { %p14_p11 = scmp.ge.s32.totalorder %s17_s28, 8   ;;  %s5132_s25 = smov %s4124_s27 }
 0x31d   : > { %s5133_s26 = smov %s5136_s29  ;;  %s5134_s27 = smov %s5140_s30 }
 0x31e   :  { %16 = sbr.rel (!%p14_p11) target bundleno = 3 (0x3), region = 150 }
 0x323   :  { %2810 = vsyncmov [#allocation4] }
 0x326   :  { %s2811_s20 = vpop.sfrf %2810 }
 0x327   :  { %p3787_p12 = scmp.ne.s32.totalorder %s2811_s20, 0 }
 0x329   :  { %2815 = shalt.err (%p3787_p12)  }
 0x32a   :  { %2817 = vsyncmov [#allocation4 + $0x1] }
 0x32d   :  { %s2818_s17 = vpop.sfrf %2817 }
 0x32e   :  { %p3788_p13 = scmp.ne.s32.totalorder %s2818_s17, 0 }
 0x330   :  { %2822 = shalt.err (%p3788_p13)  }

</bundles_post_ra>
